<compile_context>
chip_gen: v6e
topology: v6e:2x2x1
jax: 0.10.0
libtpu: 0.0.40
codegen_flags: <defaults>
</compile_context>

<pallas_src>
import math

import jax
import jax.numpy as jnp
from jax.experimental import pallas as pl
from jax.experimental.pallas import tpu as pltpu

# ---- small, module-consistent shapes (dim must be divisible by num_heads=8) ----
BATCH = 4        # torch module uses 21; small even batch for the example
NUM_TOKEN = 8    # "speical_num_token"
DIM = 128        # torch module uses 512; lane-friendly multiple of 128
NUM_HEADS = 8
HEAD_DIM = DIM // NUM_HEADS
SEQ = 16         # key/value sequence length of `input`
B_BLK = 2        # batch elements per grid step -> grid=(2,), shardable on v7x megacore


def _mha_kernel(q_ref, x_ref,
                wq_ref, wkv_ref, wo_ref,
                bq_ref, bkv_ref, bo_ref,
                o_ref, ctx_ref):
    # q_ref: (Bb, T, D) bf16, x_ref: (Bb, S, D) bf16
    # wq/wo: (D, D) bf16, wkv: (D, 2D) bf16, biases: f32
    # ctx_ref: (Bb*T, D) f32 VMEM scratch
    bb, t, d = q_ref.shape
    s_len = x_ref.shape[1]

    # Flatten the batch block into the matmul M dimension (layout no-op: lane dim
    # unchanged, sublane dims are multiples of 8).
    qf = q_ref[...].reshape(bb * t, d)           # (Bb*T, D) bf16
    xf = x_ref[...].reshape(bb * s_len, d)       # (Bb*S, D) bf16

    # Input projections: bf16 operands on the MXU, f32 accumulation; fused K/V.
    qp = jnp.dot(qf, wq_ref[...], preferred_element_type=jnp.float32) + bq_ref[...]
    kv = jnp.dot(xf, wkv_ref[...], preferred_element_type=jnp.float32) + bkv_ref[...]
    kp = kv[:, :d]                               # (Bb*S, D) lane-aligned slice
    vp = kv[:, d:]                               # (Bb*S, D)

    scale = 1.0 / math.sqrt(HEAD_DIM)

    for b in range(bb):                          # static unroll over the batch block
        qp_b = qp[b * t:(b + 1) * t, :] * scale  # (T, D), scaled once for all heads
        kp_b = kp[b * s_len:(b + 1) * s_len, :]  # (S, D)
        vp_b = vp[b * s_len:(b + 1) * s_len, :]  # (S, D)
        kpT = kp_b.T                             # (D, S): single transpose per element

        for h in range(NUM_HEADS):               # static unroll over 8 heads
            sl = slice(h * HEAD_DIM, (h + 1) * HEAD_DIM)
            qh = qp_b[:, sl]                     # (T, hd)
            khT = kpT[sl, :]                     # (hd, S) sublane slice
            s = jnp.dot(qh, khT, preferred_element_type=jnp.float32)   # (T, S) f32
            # softmax in f32; approx reciprocal goes to the EUP slot
            s = s - jnp.max(s, axis=-1, keepdims=True)
            p = jnp.exp(s)
            p = p * pl.reciprocal(jnp.sum(p, axis=-1, keepdims=True), approx=True)
            oh = jnp.dot(p, vp_b[:, sl], preferred_element_type=jnp.float32)  # (T, hd)
            ctx_ref[b * t:(b + 1) * t, sl] = oh  # direct store, no concatenate

    # Output projection over the whole block: (Bb*T, D) x (D, D) in bf16 on the MXU.
    ctx = ctx_ref[...].astype(jnp.bfloat16)
    out = jnp.dot(ctx, wo_ref[...], preferred_element_type=jnp.float32) + bo_ref[...]
    o_ref[...] = out.reshape(bb, t, d).astype(o_ref.dtype)


def token_mha_forward(query, x, wq, wk, wv, bq, bk, bv, wo, bo, *, b_blk=B_BLK):
    B, T, D = query.shape
    S = x.shape[1]
    assert B % b_blk == 0, "batch must be divisible by the per-step batch block"

    # Host-side prep: bf16 matmul operands, fused K/V projection weights/biases.
    q_bf = query.astype(jnp.bfloat16)
    x_bf = x.astype(jnp.bfloat16)
    wq_bf = wq.astype(jnp.bfloat16)
    wkv_bf = jnp.concatenate([wk, wv], axis=1).astype(jnp.bfloat16)   # (D, 2D)
    wo_bf = wo.astype(jnp.bfloat16)
    bq_f = bq.astype(jnp.float32)
    bkv_f = jnp.concatenate([bk, bv], axis=1).astype(jnp.float32)     # (1, 2D)
    bo_f = bo.astype(jnp.float32)

    const = lambda i: (0, 0)
    return pl.pallas_call(
        _mha_kernel,
        out_shape=jax.ShapeDtypeStruct((B, T, D), jnp.float32),
        grid_spec=pltpu.PrefetchScalarGridSpec(
            num_scalar_prefetch=0,
            grid=(B // b_blk,),
            in_specs=[
                pl.BlockSpec((b_blk, T, D), lambda i: (i, 0, 0)),     # query block
                pl.BlockSpec((b_blk, S, D), lambda i: (i, 0, 0)),     # input block (K=V)
                pl.BlockSpec((D, D), const),                          # Wq
                pl.BlockSpec((D, 2 * D), const),                      # Wkv (fused)
                pl.BlockSpec((D, D), const),                          # Wo
                pl.BlockSpec((1, D), const),                          # bq
                pl.BlockSpec((1, 2 * D), const),                      # bkv (fused)
                pl.BlockSpec((1, D), const),                          # bo
            ],
            out_specs=pl.BlockSpec((b_blk, T, D), lambda i: (i, 0, 0)),
            scratch_shapes=[pltpu.VMEM((b_blk * T, D), jnp.float32)],
        ),
        compiler_params=pltpu.CompilerParams(
            dimension_semantics=("parallel",)),
    )(q_bf, x_bf, wq_bf, wkv_bf, wo_bf, bq_f, bkv_f, bo_f)


def _reference(query, x, wq, wk, wv, bq, bk, bv, wo, bo):
    """Plain-JAX f32 reference of torch.nn.MultiheadAttention (eval, batch_first)."""
    B, T, D = query.shape
    S = x.shape[1]
    qp = query @ wq + bq
    kp = x @ wk + bk
    vp = x @ wv + bv
    qh = qp.reshape(B, T, NUM_HEADS, HEAD_DIM).transpose(0, 2, 1, 3)
    kh = kp.reshape(B, S, NUM_HEADS, HEAD_DIM).transpose(0, 2, 1, 3)
    vh = vp.reshape(B, S, NUM_HEADS, HEAD_DIM).transpose(0, 2, 1, 3)
    s = jnp.einsum("bhtd,bhsd->bhts", qh, kh) / math.sqrt(HEAD_DIM)
    p = jax.nn.softmax(s, axis=-1)
    ctx = jnp.einsum("bhts,bhsd->bhtd", p, vh)
    ctx = ctx.transpose(0, 2, 1, 3).reshape(B, T, D)
    return ctx @ wo + bo


if __name__ == "__main__":
    key = jax.random.PRNGKey(0)
    ks = jax.random.split(key, 8)

    # deterministic "parameters" (synthetic init; shapes match the module)
    query = jax.random.normal(ks[0], (BATCH, NUM_TOKEN, DIM), jnp.float32)   # nn.Parameter
    x = jax.random.normal(ks[1], (BATCH, SEQ, DIM), jnp.float32)             # forward input

    w_scale = 1.0 / math.sqrt(DIM)
    wq = jax.random.normal(ks[2], (DIM, DIM), jnp.float32) * w_scale
    wk = jax.random.normal(ks[3], (DIM, DIM), jnp.float32) * w_scale
    wv = jax.random.normal(ks[4], (DIM, DIM), jnp.float32) * w_scale
    wo = jax.random.normal(ks[5], (DIM, DIM), jnp.float32) * w_scale
    bq = jax.random.normal(ks[6], (1, DIM), jnp.float32) * 0.01
    bk = jnp.zeros((1, DIM), jnp.float32)
    bv = jax.random.normal(ks[7], (1, DIM), jnp.float32) * 0.01
    bo = jnp.zeros((1, DIM), jnp.float32)

    out = token_mha_forward(query, x, wq, wk, wv, bq, bk, bv, wo, bo)
    out = jax.block_until_ready(out)

    ref = _reference(query, x, wq, wk, wv, bq, bk, bv, wo, bo)
    assert out.shape == (BATCH, NUM_TOKEN, DIM)
    # bf16 matmul operands (f32 accumulation) -> loosen tolerance vs the f32 reference.
    assert jnp.allclose(out, ref, atol=5e-2, rtol=5e-2), "mismatch vs JAX reference"

    print("KERNEL_OK")
</pallas_src>

<mosaic_0001>
module attributes {stable_mosaic.version = 11 : i64} {
  func.func @_mha_kernel(%arg0: i32, %arg1: memref<2x8x128xbf16, #tpu.memory_space<vmem>>, %arg2: memref<2x16x128xbf16, #tpu.memory_space<vmem>>, %arg3: memref<128x128xbf16, #tpu.memory_space<vmem>>, %arg4: memref<128x256xbf16, #tpu.memory_space<vmem>>, %arg5: memref<128x128xbf16, #tpu.memory_space<vmem>>, %arg6: memref<1x128xf32, #tpu.memory_space<vmem>>, %arg7: memref<1x256xf32, #tpu.memory_space<vmem>>, %arg8: memref<1x128xf32, #tpu.memory_space<vmem>>, %arg9: memref<2x8x128xf32, #tpu.memory_space<vmem>>, %arg10: memref<16x128xf32, #tpu.memory_space<vmem>>) attributes {dimension_semantics = [#tpu.dimension_semantics<parallel>], iteration_bounds = array<i64: 2>, scalar_prefetch = 0 : i64, scratch_operands = 1 : i64, tpu.core_type = #tpu.core_type<tc>, window_params = [{transform_indices = @transform_0, window_bounds = array<i64: 2, 8, 128>}, {transform_indices = @transform_1, window_bounds = array<i64: 2, 16, 128>}, {pipeline_mode = #tpu.pipeline_mode<synchronous>, transform_indices = @transform_2, window_bounds = array<i64: 128, 128>}, {pipeline_mode = #tpu.pipeline_mode<synchronous>, transform_indices = @transform_3, window_bounds = array<i64: 128, 256>}, {pipeline_mode = #tpu.pipeline_mode<synchronous>, transform_indices = @transform_4, window_bounds = array<i64: 128, 128>}, {pipeline_mode = #tpu.pipeline_mode<synchronous>, transform_indices = @transform_5, window_bounds = array<i64: 1, 128>}, {pipeline_mode = #tpu.pipeline_mode<synchronous>, transform_indices = @transform_6, window_bounds = array<i64: 1, 256>}, {pipeline_mode = #tpu.pipeline_mode<synchronous>, transform_indices = @transform_7, window_bounds = array<i64: 1, 128>}, {transform_indices = @transform_8, window_bounds = array<i64: 2, 8, 128>}]} {
    %c0 = arith.constant 0 : index
    %c0_0 = arith.constant 0 : index
    %c0_1 = arith.constant 0 : index
    %0 = vector.load %arg1[%c0, %c0_0, %c0_1] : memref<2x8x128xbf16, #tpu.memory_space<vmem>>, vector<2x8x128xbf16>
    %1 = vector.shape_cast %0 : vector<2x8x128xbf16> to vector<16x128xbf16>
    %c0_2 = arith.constant 0 : index
    %c0_3 = arith.constant 0 : index
    %c0_4 = arith.constant 0 : index
    %2 = vector.load %arg2[%c0_2, %c0_3, %c0_4] : memref<2x16x128xbf16, #tpu.memory_space<vmem>>, vector<2x16x128xbf16>
    %3 = vector.shape_cast %2 : vector<2x16x128xbf16> to vector<32x128xbf16>
    %c0_5 = arith.constant 0 : index
    %c0_6 = arith.constant 0 : index
    %4 = vector.load %arg3[%c0_5, %c0_6] : memref<128x128xbf16, #tpu.memory_space<vmem>>, vector<128x128xbf16>
    %cst = arith.constant dense<0.000000e+00> : vector<16x128xf32>
    %5 = tpu.matmul %1, %4, %cst {dimension_numbers = #tpu.dot_dimension_numbers<[1], [0], [0], [1], [0, 0, 1, 1], [], []>} : vector<16x128xbf16>, vector<128x128xbf16>, vector<16x128xf32> -> vector<16x128xf32>
    %c0_7 = arith.constant 0 : index
    %c0_8 = arith.constant 0 : index
    %6 = vector.load %arg6[%c0_7, %c0_8] : memref<1x128xf32, #tpu.memory_space<vmem>>, vector<1x128xf32>
    %7 = vector.broadcast %6 : vector<1x128xf32> to vector<16x128xf32>
    %8 = arith.addf %5, %7 : vector<16x128xf32>
    %c0_9 = arith.constant 0 : index
    %c0_10 = arith.constant 0 : index
    %9 = vector.load %arg4[%c0_9, %c0_10] : memref<128x256xbf16, #tpu.memory_space<vmem>>, vector<128x256xbf16>
    %cst_11 = arith.constant dense<0.000000e+00> : vector<32x256xf32>
    %10 = tpu.matmul %3, %9, %cst_11 {dimension_numbers = #tpu.dot_dimension_numbers<[1], [0], [0], [1], [0, 0, 1, 1], [], []>} : vector<32x128xbf16>, vector<128x256xbf16>, vector<32x256xf32> -> vector<32x256xf32>
    %c0_12 = arith.constant 0 : index
    %c0_13 = arith.constant 0 : index
    %11 = vector.load %arg7[%c0_12, %c0_13] : memref<1x256xf32, #tpu.memory_space<vmem>>, vector<1x256xf32>
    %12 = vector.broadcast %11 : vector<1x256xf32> to vector<32x256xf32>
    %13 = arith.addf %10, %12 : vector<32x256xf32>
    %14 = vector.extract_strided_slice %13 {offsets = [0, 0], sizes = [32, 128], strides = [1, 1]} : vector<32x256xf32> to vector<32x128xf32>
    %15 = vector.extract_strided_slice %13 {offsets = [0, 128], sizes = [32, 128], strides = [1, 1]} : vector<32x256xf32> to vector<32x128xf32>
    %16 = vector.extract_strided_slice %8 {offsets = [0, 0], sizes = [8, 128], strides = [1, 1]} : vector<16x128xf32> to vector<8x128xf32>
    %cst_14 = arith.constant 2.500000e-01 : f32
    %17 = vector.broadcast %cst_14 : f32 to vector<8x128xf32>
    %18 = arith.mulf %16, %17 : vector<8x128xf32>
    %19 = vector.extract_strided_slice %14 {offsets = [0, 0], sizes = [16, 128], strides = [1, 1]} : vector<32x128xf32> to vector<16x128xf32>
    %20 = vector.extract_strided_slice %15 {offsets = [0, 0], sizes = [16, 128], strides = [1, 1]} : vector<32x128xf32> to vector<16x128xf32>
    %21 = tpu.transpose %19, [1, 0] : vector<16x128xf32> -> vector<128x16xf32>
    %22 = vector.extract_strided_slice %18 {offsets = [0, 0], sizes = [8, 16], strides = [1, 1]} : vector<8x128xf32> to vector<8x16xf32>
    %23 = vector.extract_strided_slice %21 {offsets = [0, 0], sizes = [16, 16], strides = [1, 1]} : vector<128x16xf32> to vector<16x16xf32>
    %cst_15 = arith.constant dense<0.000000e+00> : vector<8x16xf32>
    %24 = tpu.matmul %22, %23, %cst_15 {dimension_numbers = #tpu.dot_dimension_numbers<[1], [0], [0], [1], [0, 0, 1, 1], [], []>} : vector<8x16xf32>, vector<16x16xf32>, vector<8x16xf32> -> vector<8x16xf32>
    %cst_16 = arith.constant dense<0xFF800000> : vector<8xf32>
    %25 = vector.multi_reduction <maximumf>, %24, %cst_16 [1] : vector<8x16xf32> to vector<8xf32>
    %26 = vector.shape_cast %25 : vector<8xf32> to vector<8x1xf32>
    %27 = vector.broadcast %26 : vector<8x1xf32> to vector<8x16xf32>
    %28 = arith.subf %24, %27 : vector<8x16xf32>
    %29 = math.exp %28 : vector<8x16xf32>
    %cst_17 = arith.constant dense<0.000000e+00> : vector<8xf32>
    %30 = vector.multi_reduction <add>, %29, %cst_17 [1] : vector<8x16xf32> to vector<8xf32>
    %31 = vector.shape_cast %30 : vector<8xf32> to vector<8x1xf32>
    %32 = tpu.reciprocal %31 {approx = true} : vector<8x1xf32> -> vector<8x1xf32>
    %33 = vector.broadcast %32 : vector<8x1xf32> to vector<8x16xf32>
    %34 = arith.mulf %29, %33 : vector<8x16xf32>
    %35 = vector.extract_strided_slice %20 {offsets = [0, 0], sizes = [16, 16], strides = [1, 1]} : vector<16x128xf32> to vector<16x16xf32>
    %cst_18 = arith.constant dense<0.000000e+00> : vector<8x16xf32>
    %36 = tpu.matmul %34, %35, %cst_18 {dimension_numbers = #tpu.dot_dimension_numbers<[1], [0], [0], [1], [0, 0, 1, 1], [], []>} : vector<8x16xf32>, vector<16x16xf32>, vector<8x16xf32> -> vector<8x16xf32>
    %c0_19 = arith.constant 0 : index
    %c0_20 = arith.constant 0 : index
    %37 = vector.load %arg10[%c0_19, %c0_20] : memref<16x128xf32, #tpu.memory_space<vmem>>, vector<8x16xf32>
    tpu.vector_store %arg10[%c0_19, %c0_20], %36 {strides = array<i32>} : memref<16x128xf32, #tpu.memory_space<vmem>>, vector<8x16xf32>,
    %38 = vector.extract_strided_slice %18 {offsets = [0, 16], sizes = [8, 16], strides = [1, 1]} : vector<8x128xf32> to vector<8x16xf32>
    %39 = vector.extract_strided_slice %21 {offsets = [16, 0], sizes = [16, 16], strides = [1, 1]} : vector<128x16xf32> to vector<16x16xf32>
    %cst_21 = arith.constant dense<0.000000e+00> : vector<8x16xf32>
    %40 = tpu.matmul %38, %39, %cst_21 {dimension_numbers = #tpu.dot_dimension_numbers<[1], [0], [0], [1], [0, 0, 1, 1], [], []>} : vector<8x16xf32>, vector<16x16xf32>, vector<8x16xf32> -> vector<8x16xf32>
    %cst_22 = arith.constant dense<0xFF800000> : vector<8xf32>
    %41 = vector.multi_reduction <maximumf>, %40, %cst_22 [1] : vector<8x16xf32> to vector<8xf32>
    %42 = vector.shape_cast %41 : vector<8xf32> to vector<8x1xf32>
    %43 = vector.broadcast %42 : vector<8x1xf32> to vector<8x16xf32>
    %44 = arith.subf %40, %43 : vector<8x16xf32>
    %45 = math.exp %44 : vector<8x16xf32>
    %cst_23 = arith.constant dense<0.000000e+00> : vector<8xf32>
    %46 = vector.multi_reduction <add>, %45, %cst_23 [1] : vector<8x16xf32> to vector<8xf32>
    %47 = vector.shape_cast %46 : vector<8xf32> to vector<8x1xf32>
    %48 = tpu.reciprocal %47 {approx = true} : vector<8x1xf32> -> vector<8x1xf32>
    %49 = vector.broadcast %48 : vector<8x1xf32> to vector<8x16xf32>
    %50 = arith.mulf %45, %49 : vector<8x16xf32>
    %51 = vector.extract_strided_slice %20 {offsets = [0, 16], sizes = [16, 16], strides = [1, 1]} : vector<16x128xf32> to vector<16x16xf32>
    %cst_24 = arith.constant dense<0.000000e+00> : vector<8x16xf32>
    %52 = tpu.matmul %50, %51, %cst_24 {dimension_numbers = #tpu.dot_dimension_numbers<[1], [0], [0], [1], [0, 0, 1, 1], [], []>} : vector<8x16xf32>, vector<16x16xf32>, vector<8x16xf32> -> vector<8x16xf32>
    %c0_25 = arith.constant 0 : index
    %c16 = arith.constant 16 : index
    %53 = vector.load %arg10[%c0_25, %c16] : memref<16x128xf32, #tpu.memory_space<vmem>>, vector<8x16xf32>
    tpu.vector_store %arg10[%c0_25, %c16], %52 {strides = array<i32>} : memref<16x128xf32, #tpu.memory_space<vmem>>, vector<8x16xf32>,
    %54 = vector.extract_strided_slice %18 {offsets = [0, 32], sizes = [8, 16], strides = [1, 1]} : vector<8x128xf32> to vector<8x16xf32>
    %55 = vector.extract_strided_slice %21 {offsets = [32, 0], sizes = [16, 16], strides = [1, 1]} : vector<128x16xf32> to vector<16x16xf32>
    %cst_26 = arith.constant dense<0.000000e+00> : vector<8x16xf32>
    %56 = tpu.matmul %54, %55, %cst_26 {dimension_numbers = #tpu.dot_dimension_numbers<[1], [0], [0], [1], [0, 0, 1, 1], [], []>} : vector<8x16xf32>, vector<16x16xf32>, vector<8x16xf32> -> vector<8x16xf32>
    %cst_27 = arith.constant dense<0xFF800000> : vector<8xf32>
    %57 = vector.multi_reduction <maximumf>, %56, %cst_27 [1] : vector<8x16xf32> to vector<8xf32>
    %58 = vector.shape_cast %57 : vector<8xf32> to vector<8x1xf32>
    %59 = vector.broadcast %58 : vector<8x1xf32> to vector<8x16xf32>
    %60 = arith.subf %56, %59 : vector<8x16xf32>
    %61 = math.exp %60 : vector<8x16xf32>
    %cst_28 = arith.constant dense<0.000000e+00> : vector<8xf32>
    %62 = vector.multi_reduction <add>, %61, %cst_28 [1] : vector<8x16xf32> to vector<8xf32>
    %63 = vector.shape_cast %62 : vector<8xf32> to vector<8x1xf32>
    %64 = tpu.reciprocal %63 {approx = true} : vector<8x1xf32> -> vector<8x1xf32>
    %65 = vector.broadcast %64 : vector<8x1xf32> to vector<8x16xf32>
    %66 = arith.mulf %61, %65 : vector<8x16xf32>
    %67 = vector.extract_strided_slice %20 {offsets = [0, 32], sizes = [16, 16], strides = [1, 1]} : vector<16x128xf32> to vector<16x16xf32>
    %cst_29 = arith.constant dense<0.000000e+00> : vector<8x16xf32>
    %68 = tpu.matmul %66, %67, %cst_29 {dimension_numbers = #tpu.dot_dimension_numbers<[1], [0], [0], [1], [0, 0, 1, 1], [], []>} : vector<8x16xf32>, vector<16x16xf32>, vector<8x16xf32> -> vector<8x16xf32>
    %c0_30 = arith.constant 0 : index
    %c32 = arith.constant 32 : index
    %69 = vector.load %arg10[%c0_30, %c32] : memref<16x128xf32, #tpu.memory_space<vmem>>, vector<8x16xf32>
    tpu.vector_store %arg10[%c0_30, %c32], %68 {strides = array<i32>} : memref<16x128xf32, #tpu.memory_space<vmem>>, vector<8x16xf32>,
    %70 = vector.extract_strided_slice %18 {offsets = [0, 48], sizes = [8, 16], strides = [1, 1]} : vector<8x128xf32> to vector<8x16xf32>
    %71 = vector.extract_strided_slice %21 {offsets = [48, 0], sizes = [16, 16], strides = [1, 1]} : vector<128x16xf32> to vector<16x16xf32>
    %cst_31 = arith.constant dense<0.000000e+00> : vector<8x16xf32>
    %72 = tpu.matmul %70, %71, %cst_31 {dimension_numbers = #tpu.dot_dimension_numbers<[1], [0], [0], [1], [0, 0, 1, 1], [], []>} : vector<8x16xf32>, vector<16x16xf32>, vector<8x16xf32> -> vector<8x16xf32>
    %cst_32 = arith.constant dense<0xFF800000> : vector<8xf32>
    %73 = vector.multi_reduction <maximumf>, %72, %cst_32 [1] : vector<8x16xf32> to vector<8xf32>
    %74 = vector.shape_cast %73 : vector<8xf32> to vector<8x1xf32>
    %75 = vector.broadcast %74 : vector<8x1xf32> to vector<8x16xf32>
    %76 = arith.subf %72, %75 : vector<8x16xf32>
    %77 = math.exp %76 : vector<8x16xf32>
    %cst_33 = arith.constant dense<0.000000e+00> : vector<8xf32>
    %78 = vector.multi_reduction <add>, %77, %cst_33 [1] : vector<8x16xf32> to vector<8xf32>
    %79 = vector.shape_cast %78 : vector<8xf32> to vector<8x1xf32>
    %80 = tpu.reciprocal %79 {approx = true} : vector<8x1xf32> -> vector<8x1xf32>
    %81 = vector.broadcast %80 : vector<8x1xf32> to vector<8x16xf32>
    %82 = arith.mulf %77, %81 : vector<8x16xf32>
    %83 = vector.extract_strided_slice %20 {offsets = [0, 48], sizes = [16, 16], strides = [1, 1]} : vector<16x128xf32> to vector<16x16xf32>
    %cst_34 = arith.constant dense<0.000000e+00> : vector<8x16xf32>
    %84 = tpu.matmul %82, %83, %cst_34 {dimension_numbers = #tpu.dot_dimension_numbers<[1], [0], [0], [1], [0, 0, 1, 1], [], []>} : vector<8x16xf32>, vector<16x16xf32>, vector<8x16xf32> -> vector<8x16xf32>
    %c0_35 = arith.constant 0 : index
    %c48 = arith.constant 48 : index
    %85 = vector.load %arg10[%c0_35, %c48] : memref<16x128xf32, #tpu.memory_space<vmem>>, vector<8x16xf32>
    tpu.vector_store %arg10[%c0_35, %c48], %84 {strides = array<i32>} : memref<16x128xf32, #tpu.memory_space<vmem>>, vector<8x16xf32>,
    %86 = vector.extract_strided_slice %18 {offsets = [0, 64], sizes = [8, 16], strides = [1, 1]} : vector<8x128xf32> to vector<8x16xf32>
    %87 = vector.extract_strided_slice %21 {offsets = [64, 0], sizes = [16, 16], strides = [1, 1]} : vector<128x16xf32> to vector<16x16xf32>
    %cst_36 = arith.constant dense<0.000000e+00> : vector<8x16xf32>
    %88 = tpu.matmul %86, %87, %cst_36 {dimension_numbers = #tpu.dot_dimension_numbers<[1], [0], [0], [1], [0, 0, 1, 1], [], []>} : vector<8x16xf32>, vector<16x16xf32>, vector<8x16xf32> -> vector<8x16xf32>
    %cst_37 = arith.constant dense<0xFF800000> : vector<8xf32>
    %89 = vector.multi_reduction <maximumf>, %88, %cst_37 [1] : vector<8x16xf32> to vector<8xf32>
    %90 = vector.shape_cast %89 : vector<8xf32> to vector<8x1xf32>
    %91 = vector.broadcast %90 : vector<8x1xf32> to vector<8x16xf32>
    %92 = arith.subf %88, %91 : vector<8x16xf32>
    %93 = math.exp %92 : vector<8x16xf32>
    %cst_38 = arith.constant dense<0.000000e+00> : vector<8xf32>
    %94 = vector.multi_reduction <add>, %93, %cst_38 [1] : vector<8x16xf32> to vector<8xf32>
    %95 = vector.shape_cast %94 : vector<8xf32> to vector<8x1xf32>
    %96 = tpu.reciprocal %95 {approx = true} : vector<8x1xf32> -> vector<8x1xf32>
    %97 = vector.broadcast %96 : vector<8x1xf32> to vector<8x16xf32>
    %98 = arith.mulf %93, %97 : vector<8x16xf32>
    %99 = vector.extract_strided_slice %20 {offsets = [0, 64], sizes = [16, 16], strides = [1, 1]} : vector<16x128xf32> to vector<16x16xf32>
    %cst_39 = arith.constant dense<0.000000e+00> : vector<8x16xf32>
    %100 = tpu.matmul %98, %99, %cst_39 {dimension_numbers = #tpu.dot_dimension_numbers<[1], [0], [0], [1], [0, 0, 1, 1], [], []>} : vector<8x16xf32>, vector<16x16xf32>, vector<8x16xf32> -> vector<8x16xf32>
    %c0_40 = arith.constant 0 : index
    %c64 = arith.constant 64 : index
    %101 = vector.load %arg10[%c0_40, %c64] : memref<16x128xf32, #tpu.memory_space<vmem>>, vector<8x16xf32>
    tpu.vector_store %arg10[%c0_40, %c64], %100 {strides = array<i32>} : memref<16x128xf32, #tpu.memory_space<vmem>>, vector<8x16xf32>,
    %102 = vector.extract_strided_slice %18 {offsets = [0, 80], sizes = [8, 16], strides = [1, 1]} : vector<8x128xf32> to vector<8x16xf32>
    %103 = vector.extract_strided_slice %21 {offsets = [80, 0], sizes = [16, 16], strides = [1, 1]} : vector<128x16xf32> to vector<16x16xf32>
    %cst_41 = arith.constant dense<0.000000e+00> : vector<8x16xf32>
    %104 = tpu.matmul %102, %103, %cst_41 {dimension_numbers = #tpu.dot_dimension_numbers<[1], [0], [0], [1], [0, 0, 1, 1], [], []>} : vector<8x16xf32>, vector<16x16xf32>, vector<8x16xf32> -> vector<8x16xf32>
    %cst_42 = arith.constant dense<0xFF800000> : vector<8xf32>
    %105 = vector.multi_reduction <maximumf>, %104, %cst_42 [1] : vector<8x16xf32> to vector<8xf32>
    %106 = vector.shape_cast %105 : vector<8xf32> to vector<8x1xf32>
    %107 = vector.broadcast %106 : vector<8x1xf32> to vector<8x16xf32>
    %108 = arith.subf %104, %107 : vector<8x16xf32>
    %109 = math.exp %108 : vector<8x16xf32>
    %cst_43 = arith.constant dense<0.000000e+00> : vector<8xf32>
    %110 = vector.multi_reduction <add>, %109, %cst_43 [1] : vector<8x16xf32> to vector<8xf32>
    %111 = vector.shape_cast %110 : vector<8xf32> to vector<8x1xf32>
    %112 = tpu.reciprocal %111 {approx = true} : vector<8x1xf32> -> vector<8x1xf32>
    %113 = vector.broadcast %112 : vector<8x1xf32> to vector<8x16xf32>
    %114 = arith.mulf %109, %113 : vector<8x16xf32>
    %115 = vector.extract_strided_slice %20 {offsets = [0, 80], sizes = [16, 16], strides = [1, 1]} : vector<16x128xf32> to vector<16x16xf32>
    %cst_44 = arith.constant dense<0.000000e+00> : vector<8x16xf32>
    %116 = tpu.matmul %114, %115, %cst_44 {dimension_numbers = #tpu.dot_dimension_numbers<[1], [0], [0], [1], [0, 0, 1, 1], [], []>} : vector<8x16xf32>, vector<16x16xf32>, vector<8x16xf32> -> vector<8x16xf32>
    %c0_45 = arith.constant 0 : index
    %c80 = arith.constant 80 : index
    %117 = vector.load %arg10[%c0_45, %c80] : memref<16x128xf32, #tpu.memory_space<vmem>>, vector<8x16xf32>
    tpu.vector_store %arg10[%c0_45, %c80], %116 {strides = array<i32>} : memref<16x128xf32, #tpu.memory_space<vmem>>, vector<8x16xf32>,
    %118 = vector.extract_strided_slice %18 {offsets = [0, 96], sizes = [8, 16], strides = [1, 1]} : vector<8x128xf32> to vector<8x16xf32>
    %119 = vector.extract_strided_slice %21 {offsets = [96, 0], sizes = [16, 16], strides = [1, 1]} : vector<128x16xf32> to vector<16x16xf32>
    %cst_46 = arith.constant dense<0.000000e+00> : vector<8x16xf32>
    %120 = tpu.matmul %118, %119, %cst_46 {dimension_numbers = #tpu.dot_dimension_numbers<[1], [0], [0], [1], [0, 0, 1, 1], [], []>} : vector<8x16xf32>, vector<16x16xf32>, vector<8x16xf32> -> vector<8x16xf32>
    %cst_47 = arith.constant dense<0xFF800000> : vector<8xf32>
    %121 = vector.multi_reduction <maximumf>, %120, %cst_47 [1] : vector<8x16xf32> to vector<8xf32>
    %122 = vector.shape_cast %121 : vector<8xf32> to vector<8x1xf32>
    %123 = vector.broadcast %122 : vector<8x1xf32> to vector<8x16xf32>
    %124 = arith.subf %120, %123 : vector<8x16xf32>
    %125 = math.exp %124 : vector<8x16xf32>
    %cst_48 = arith.constant dense<0.000000e+00> : vector<8xf32>
    %126 = vector.multi_reduction <add>, %125, %cst_48 [1] : vector<8x16xf32> to vector<8xf32>
    %127 = vector.shape_cast %126 : vector<8xf32> to vector<8x1xf32>
    %128 = tpu.reciprocal %127 {approx = true} : vector<8x1xf32> -> vector<8x1xf32>
    %129 = vector.broadcast %128 : vector<8x1xf32> to vector<8x16xf32>
    %130 = arith.mulf %125, %129 : vector<8x16xf32>
    %131 = vector.extract_strided_slice %20 {offsets = [0, 96], sizes = [16, 16], strides = [1, 1]} : vector<16x128xf32> to vector<16x16xf32>
    %cst_49 = arith.constant dense<0.000000e+00> : vector<8x16xf32>
    %132 = tpu.matmul %130, %131, %cst_49 {dimension_numbers = #tpu.dot_dimension_numbers<[1], [0], [0], [1], [0, 0, 1, 1], [], []>} : vector<8x16xf32>, vector<16x16xf32>, vector<8x16xf32> -> vector<8x16xf32>
    %c0_50 = arith.constant 0 : index
    %c96 = arith.constant 96 : index
    %133 = vector.load %arg10[%c0_50, %c96] : memref<16x128xf32, #tpu.memory_space<vmem>>, vector<8x16xf32>
    tpu.vector_store %arg10[%c0_50, %c96], %132 {strides = array<i32>} : memref<16x128xf32, #tpu.memory_space<vmem>>, vector<8x16xf32>,
    %134 = vector.extract_strided_slice %18 {offsets = [0, 112], sizes = [8, 16], strides = [1, 1]} : vector<8x128xf32> to vector<8x16xf32>
    %135 = vector.extract_strided_slice %21 {offsets = [112, 0], sizes = [16, 16], strides = [1, 1]} : vector<128x16xf32> to vector<16x16xf32>
    %cst_51 = arith.constant dense<0.000000e+00> : vector<8x16xf32>
    %136 = tpu.matmul %134, %135, %cst_51 {dimension_numbers = #tpu.dot_dimension_numbers<[1], [0], [0], [1], [0, 0, 1, 1], [], []>} : vector<8x16xf32>, vector<16x16xf32>, vector<8x16xf32> -> vector<8x16xf32>
    %cst_52 = arith.constant dense<0xFF800000> : vector<8xf32>
    %137 = vector.multi_reduction <maximumf>, %136, %cst_52 [1] : vector<8x16xf32> to vector<8xf32>
    %138 = vector.shape_cast %137 : vector<8xf32> to vector<8x1xf32>
    %139 = vector.broadcast %138 : vector<8x1xf32> to vector<8x16xf32>
    %140 = arith.subf %136, %139 : vector<8x16xf32>
    %141 = math.exp %140 : vector<8x16xf32>
    %cst_53 = arith.constant dense<0.000000e+00> : vector<8xf32>
    %142 = vector.multi_reduction <add>, %141, %cst_53 [1] : vector<8x16xf32> to vector<8xf32>
    %143 = vector.shape_cast %142 : vector<8xf32> to vector<8x1xf32>
    %144 = tpu.reciprocal %143 {approx = true} : vector<8x1xf32> -> vector<8x1xf32>
    %145 = vector.broadcast %144 : vector<8x1xf32> to vector<8x16xf32>
    %146 = arith.mulf %141, %145 : vector<8x16xf32>
    %147 = vector.extract_strided_slice %20 {offsets = [0, 112], sizes = [16, 16], strides = [1, 1]} : vector<16x128xf32> to vector<16x16xf32>
    %cst_54 = arith.constant dense<0.000000e+00> : vector<8x16xf32>
    %148 = tpu.matmul %146, %147, %cst_54 {dimension_numbers = #tpu.dot_dimension_numbers<[1], [0], [0], [1], [0, 0, 1, 1], [], []>} : vector<8x16xf32>, vector<16x16xf32>, vector<8x16xf32> -> vector<8x16xf32>
    %c0_55 = arith.constant 0 : index
    %c112 = arith.constant 112 : index
    %149 = vector.load %arg10[%c0_55, %c112] : memref<16x128xf32, #tpu.memory_space<vmem>>, vector<8x16xf32>
    tpu.vector_store %arg10[%c0_55, %c112], %148 {strides = array<i32>} : memref<16x128xf32, #tpu.memory_space<vmem>>, vector<8x16xf32>,
    %150 = vector.extract_strided_slice %8 {offsets = [8, 0], sizes = [8, 128], strides = [1, 1]} : vector<16x128xf32> to vector<8x128xf32>
    %cst_56 = arith.constant 2.500000e-01 : f32
    %151 = vector.broadcast %cst_56 : f32 to vector<8x128xf32>
    %152 = arith.mulf %150, %151 : vector<8x128xf32>
    %153 = vector.extract_strided_slice %14 {offsets = [16, 0], sizes = [16, 128], strides = [1, 1]} : vector<32x128xf32> to vector<16x128xf32>
    %154 = vector.extract_strided_slice %15 {offsets = [16, 0], sizes = [16, 128], strides = [1, 1]} : vector<32x128xf32> to vector<16x128xf32>
    %155 = tpu.transpose %153, [1, 0] : vector<16x128xf32> -> vector<128x16xf32>
    %156 = vector.extract_strided_slice %152 {offsets = [0, 0], sizes = [8, 16], strides = [1, 1]} : vector<8x128xf32> to vector<8x16xf32>
    %157 = vector.extract_strided_slice %155 {offsets = [0, 0], sizes = [16, 16], strides = [1, 1]} : vector<128x16xf32> to vector<16x16xf32>
    %cst_57 = arith.constant dense<0.000000e+00> : vector<8x16xf32>
    %158 = tpu.matmul %156, %157, %cst_57 {dimension_numbers = #tpu.dot_dimension_numbers<[1], [0], [0], [1], [0, 0, 1, 1], [], []>} : vector<8x16xf32>, vector<16x16xf32>, vector<8x16xf32> -> vector<8x16xf32>
    %cst_58 = arith.constant dense<0xFF800000> : vector<8xf32>
    %159 = vector.multi_reduction <maximumf>, %158, %cst_58 [1] : vector<8x16xf32> to vector<8xf32>
    %160 = vector.shape_cast %159 : vector<8xf32> to vector<8x1xf32>
    %161 = vector.broadcast %160 : vector<8x1xf32> to vector<8x16xf32>
    %162 = arith.subf %158, %161 : vector<8x16xf32>
    %163 = math.exp %162 : vector<8x16xf32>
    %cst_59 = arith.constant dense<0.000000e+00> : vector<8xf32>
    %164 = vector.multi_reduction <add>, %163, %cst_59 [1] : vector<8x16xf32> to vector<8xf32>
    %165 = vector.shape_cast %164 : vector<8xf32> to vector<8x1xf32>
    %166 = tpu.reciprocal %165 {approx = true} : vector<8x1xf32> -> vector<8x1xf32>
    %167 = vector.broadcast %166 : vector<8x1xf32> to vector<8x16xf32>
    %168 = arith.mulf %163, %167 : vector<8x16xf32>
    %169 = vector.extract_strided_slice %154 {offsets = [0, 0], sizes = [16, 16], strides = [1, 1]} : vector<16x128xf32> to vector<16x16xf32>
    %cst_60 = arith.constant dense<0.000000e+00> : vector<8x16xf32>
    %170 = tpu.matmul %168, %169, %cst_60 {dimension_numbers = #tpu.dot_dimension_numbers<[1], [0], [0], [1], [0, 0, 1, 1], [], []>} : vector<8x16xf32>, vector<16x16xf32>, vector<8x16xf32> -> vector<8x16xf32>
    %c8 = arith.constant 8 : index
    %c0_61 = arith.constant 0 : index
    %171 = vector.load %arg10[%c8, %c0_61] : memref<16x128xf32, #tpu.memory_space<vmem>>, vector<8x16xf32>
    tpu.vector_store %arg10[%c8, %c0_61], %170 {strides = array<i32>} : memref<16x128xf32, #tpu.memory_space<vmem>>, vector<8x16xf32>,
    %172 = vector.extract_strided_slice %152 {offsets = [0, 16], sizes = [8, 16], strides = [1, 1]} : vector<8x128xf32> to vector<8x16xf32>
    %173 = vector.extract_strided_slice %155 {offsets = [16, 0], sizes = [16, 16], strides = [1, 1]} : vector<128x16xf32> to vector<16x16xf32>
    %cst_62 = arith.constant dense<0.000000e+00> : vector<8x16xf32>
    %174 = tpu.matmul %172, %173, %cst_62 {dimension_numbers = #tpu.dot_dimension_numbers<[1], [0], [0], [1], [0, 0, 1, 1], [], []>} : vector<8x16xf32>, vector<16x16xf32>, vector<8x16xf32> -> vector<8x16xf32>
    %cst_63 = arith.constant dense<0xFF800000> : vector<8xf32>
    %175 = vector.multi_reduction <maximumf>, %174, %cst_63 [1] : vector<8x16xf32> to vector<8xf32>
    %176 = vector.shape_cast %175 : vector<8xf32> to vector<8x1xf32>
    %177 = vector.broadcast %176 : vector<8x1xf32> to vector<8x16xf32>
    %178 = arith.subf %174, %177 : vector<8x16xf32>
    %179 = math.exp %178 : vector<8x16xf32>
    %cst_64 = arith.constant dense<0.000000e+00> : vector<8xf32>
    %180 = vector.multi_reduction <add>, %179, %cst_64 [1] : vector<8x16xf32> to vector<8xf32>
    %181 = vector.shape_cast %180 : vector<8xf32> to vector<8x1xf32>
    %182 = tpu.reciprocal %181 {approx = true} : vector<8x1xf32> -> vector<8x1xf32>
    %183 = vector.broadcast %182 : vector<8x1xf32> to vector<8x16xf32>
    %184 = arith.mulf %179, %183 : vector<8x16xf32>
    %185 = vector.extract_strided_slice %154 {offsets = [0, 16], sizes = [16, 16], strides = [1, 1]} : vector<16x128xf32> to vector<16x16xf32>
    %cst_65 = arith.constant dense<0.000000e+00> : vector<8x16xf32>
    %186 = tpu.matmul %184, %185, %cst_65 {dimension_numbers = #tpu.dot_dimension_numbers<[1], [0], [0], [1], [0, 0, 1, 1], [], []>} : vector<8x16xf32>, vector<16x16xf32>, vector<8x16xf32> -> vector<8x16xf32>
    %c8_66 = arith.constant 8 : index
    %c16_67 = arith.constant 16 : index
    %187 = vector.load %arg10[%c8_66, %c16_67] : memref<16x128xf32, #tpu.memory_space<vmem>>, vector<8x16xf32>
    tpu.vector_store %arg10[%c8_66, %c16_67], %186 {strides = array<i32>} : memref<16x128xf32, #tpu.memory_space<vmem>>, vector<8x16xf32>,
    %188 = vector.extract_strided_slice %152 {offsets = [0, 32], sizes = [8, 16], strides = [1, 1]} : vector<8x128xf32> to vector<8x16xf32>
    %189 = vector.extract_strided_slice %155 {offsets = [32, 0], sizes = [16, 16], strides = [1, 1]} : vector<128x16xf32> to vector<16x16xf32>
    %cst_68 = arith.constant dense<0.000000e+00> : vector<8x16xf32>
    %190 = tpu.matmul %188, %189, %cst_68 {dimension_numbers = #tpu.dot_dimension_numbers<[1], [0], [0], [1], [0, 0, 1, 1], [], []>} : vector<8x16xf32>, vector<16x16xf32>, vector<8x16xf32> -> vector<8x16xf32>
    %cst_69 = arith.constant dense<0xFF800000> : vector<8xf32>
    %191 = vector.multi_reduction <maximumf>, %190, %cst_69 [1] : vector<8x16xf32> to vector<8xf32>
    %192 = vector.shape_cast %191 : vector<8xf32> to vector<8x1xf32>
    %193 = vector.broadcast %192 : vector<8x1xf32> to vector<8x16xf32>
    %194 = arith.subf %190, %193 : vector<8x16xf32>
    %195 = math.exp %194 : vector<8x16xf32>
    %cst_70 = arith.constant dense<0.000000e+00> : vector<8xf32>
    %196 = vector.multi_reduction <add>, %195, %cst_70 [1] : vector<8x16xf32> to vector<8xf32>
    %197 = vector.shape_cast %196 : vector<8xf32> to vector<8x1xf32>
    %198 = tpu.reciprocal %197 {approx = true} : vector<8x1xf32> -> vector<8x1xf32>
    %199 = vector.broadcast %198 : vector<8x1xf32> to vector<8x16xf32>
    %200 = arith.mulf %195, %199 : vector<8x16xf32>
    %201 = vector.extract_strided_slice %154 {offsets = [0, 32], sizes = [16, 16], strides = [1, 1]} : vector<16x128xf32> to vector<16x16xf32>
    %cst_71 = arith.constant dense<0.000000e+00> : vector<8x16xf32>
    %202 = tpu.matmul %200, %201, %cst_71 {dimension_numbers = #tpu.dot_dimension_numbers<[1], [0], [0], [1], [0, 0, 1, 1], [], []>} : vector<8x16xf32>, vector<16x16xf32>, vector<8x16xf32> -> vector<8x16xf32>
    %c8_72 = arith.constant 8 : index
    %c32_73 = arith.constant 32 : index
    %203 = vector.load %arg10[%c8_72, %c32_73] : memref<16x128xf32, #tpu.memory_space<vmem>>, vector<8x16xf32>
    tpu.vector_store %arg10[%c8_72, %c32_73], %202 {strides = array<i32>} : memref<16x128xf32, #tpu.memory_space<vmem>>, vector<8x16xf32>,
    %204 = vector.extract_strided_slice %152 {offsets = [0, 48], sizes = [8, 16], strides = [1, 1]} : vector<8x128xf32> to vector<8x16xf32>
    %205 = vector.extract_strided_slice %155 {offsets = [48, 0], sizes = [16, 16], strides = [1, 1]} : vector<128x16xf32> to vector<16x16xf32>
    %cst_74 = arith.constant dense<0.000000e+00> : vector<8x16xf32>
    %206 = tpu.matmul %204, %205, %cst_74 {dimension_numbers = #tpu.dot_dimension_numbers<[1], [0], [0], [1], [0, 0, 1, 1], [], []>} : vector<8x16xf32>, vector<16x16xf32>, vector<8x16xf32> -> vector<8x16xf32>
    %cst_75 = arith.constant dense<0xFF800000> : vector<8xf32>
    %207 = vector.multi_reduction <maximumf>, %206, %cst_75 [1] : vector<8x16xf32> to vector<8xf32>
    %208 = vector.shape_cast %207 : vector<8xf32> to vector<8x1xf32>
    %209 = vector.broadcast %208 : vector<8x1xf32> to vector<8x16xf32>
    %210 = arith.subf %206, %209 : vector<8x16xf32>
    %211 = math.exp %210 : vector<8x16xf32>
    %cst_76 = arith.constant dense<0.000000e+00> : vector<8xf32>
    %212 = vector.multi_reduction <add>, %211, %cst_76 [1] : vector<8x16xf32> to vector<8xf32>
    %213 = vector.shape_cast %212 : vector<8xf32> to vector<8x1xf32>
    %214 = tpu.reciprocal %213 {approx = true} : vector<8x1xf32> -> vector<8x1xf32>
    %215 = vector.broadcast %214 : vector<8x1xf32> to vector<8x16xf32>
    %216 = arith.mulf %211, %215 : vector<8x16xf32>
    %217 = vector.extract_strided_slice %154 {offsets = [0, 48], sizes = [16, 16], strides = [1, 1]} : vector<16x128xf32> to vector<16x16xf32>
    %cst_77 = arith.constant dense<0.000000e+00> : vector<8x16xf32>
    %218 = tpu.matmul %216, %217, %cst_77 {dimension_numbers = #tpu.dot_dimension_numbers<[1], [0], [0], [1], [0, 0, 1, 1], [], []>} : vector<8x16xf32>, vector<16x16xf32>, vector<8x16xf32> -> vector<8x16xf32>
    %c8_78 = arith.constant 8 : index
    %c48_79 = arith.constant 48 : index
    %219 = vector.load %arg10[%c8_78, %c48_79] : memref<16x128xf32, #tpu.memory_space<vmem>>, vector<8x16xf32>
    tpu.vector_store %arg10[%c8_78, %c48_79], %218 {strides = array<i32>} : memref<16x128xf32, #tpu.memory_space<vmem>>, vector<8x16xf32>,
    %220 = vector.extract_strided_slice %152 {offsets = [0, 64], sizes = [8, 16], strides = [1, 1]} : vector<8x128xf32> to vector<8x16xf32>
    %221 = vector.extract_strided_slice %155 {offsets = [64, 0], sizes = [16, 16], strides = [1, 1]} : vector<128x16xf32> to vector<16x16xf32>
    %cst_80 = arith.constant dense<0.000000e+00> : vector<8x16xf32>
    %222 = tpu.matmul %220, %221, %cst_80 {dimension_numbers = #tpu.dot_dimension_numbers<[1], [0], [0], [1], [0, 0, 1, 1], [], []>} : vector<8x16xf32>, vector<16x16xf32>, vector<8x16xf32> -> vector<8x16xf32>
    %cst_81 = arith.constant dense<0xFF800000> : vector<8xf32>
    %223 = vector.multi_reduction <maximumf>, %222, %cst_81 [1] : vector<8x16xf32> to vector<8xf32>
    %224 = vector.shape_cast %223 : vector<8xf32> to vector<8x1xf32>
    %225 = vector.broadcast %224 : vector<8x1xf32> to vector<8x16xf32>
    %226 = arith.subf %222, %225 : vector<8x16xf32>
    %227 = math.exp %226 : vector<8x16xf32>
    %cst_82 = arith.constant dense<0.000000e+00> : vector<8xf32>
    %228 = vector.multi_reduction <add>, %227, %cst_82 [1] : vector<8x16xf32> to vector<8xf32>
    %229 = vector.shape_cast %228 : vector<8xf32> to vector<8x1xf32>
    %230 = tpu.reciprocal %229 {approx = true} : vector<8x1xf32> -> vector<8x1xf32>
    %231 = vector.broadcast %230 : vector<8x1xf32> to vector<8x16xf32>
    %232 = arith.mulf %227, %231 : vector<8x16xf32>
    %233 = vector.extract_strided_slice %154 {offsets = [0, 64], sizes = [16, 16], strides = [1, 1]} : vector<16x128xf32> to vector<16x16xf32>
    %cst_83 = arith.constant dense<0.000000e+00> : vector<8x16xf32>
    %234 = tpu.matmul %232, %233, %cst_83 {dimension_numbers = #tpu.dot_dimension_numbers<[1], [0], [0], [1], [0, 0, 1, 1], [], []>} : vector<8x16xf32>, vector<16x16xf32>, vector<8x16xf32> -> vector<8x16xf32>
    %c8_84 = arith.constant 8 : index
    %c64_85 = arith.constant 64 : index
    %235 = vector.load %arg10[%c8_84, %c64_85] : memref<16x128xf32, #tpu.memory_space<vmem>>, vector<8x16xf32>
    tpu.vector_store %arg10[%c8_84, %c64_85], %234 {strides = array<i32>} : memref<16x128xf32, #tpu.memory_space<vmem>>, vector<8x16xf32>,
    %236 = vector.extract_strided_slice %152 {offsets = [0, 80], sizes = [8, 16], strides = [1, 1]} : vector<8x128xf32> to vector<8x16xf32>
    %237 = vector.extract_strided_slice %155 {offsets = [80, 0], sizes = [16, 16], strides = [1, 1]} : vector<128x16xf32> to vector<16x16xf32>
    %cst_86 = arith.constant dense<0.000000e+00> : vector<8x16xf32>
    %238 = tpu.matmul %236, %237, %cst_86 {dimension_numbers = #tpu.dot_dimension_numbers<[1], [0], [0], [1], [0, 0, 1, 1], [], []>} : vector<8x16xf32>, vector<16x16xf32>, vector<8x16xf32> -> vector<8x16xf32>
    %cst_87 = arith.constant dense<0xFF800000> : vector<8xf32>
    %239 = vector.multi_reduction <maximumf>, %238, %cst_87 [1] : vector<8x16xf32> to vector<8xf32>
    %240 = vector.shape_cast %239 : vector<8xf32> to vector<8x1xf32>
    %241 = vector.broadcast %240 : vector<8x1xf32> to vector<8x16xf32>
    %242 = arith.subf %238, %241 : vector<8x16xf32>
    %243 = math.exp %242 : vector<8x16xf32>
    %cst_88 = arith.constant dense<0.000000e+00> : vector<8xf32>
    %244 = vector.multi_reduction <add>, %243, %cst_88 [1] : vector<8x16xf32> to vector<8xf32>
    %245 = vector.shape_cast %244 : vector<8xf32> to vector<8x1xf32>
    %246 = tpu.reciprocal %245 {approx = true} : vector<8x1xf32> -> vector<8x1xf32>
    %247 = vector.broadcast %246 : vector<8x1xf32> to vector<8x16xf32>
    %248 = arith.mulf %243, %247 : vector<8x16xf32>
    %249 = vector.extract_strided_slice %154 {offsets = [0, 80], sizes = [16, 16], strides = [1, 1]} : vector<16x128xf32> to vector<16x16xf32>
    %cst_89 = arith.constant dense<0.000000e+00> : vector<8x16xf32>
    %250 = tpu.matmul %248, %249, %cst_89 {dimension_numbers = #tpu.dot_dimension_numbers<[1], [0], [0], [1], [0, 0, 1, 1], [], []>} : vector<8x16xf32>, vector<16x16xf32>, vector<8x16xf32> -> vector<8x16xf32>
    %c8_90 = arith.constant 8 : index
    %c80_91 = arith.constant 80 : index
    %251 = vector.load %arg10[%c8_90, %c80_91] : memref<16x128xf32, #tpu.memory_space<vmem>>, vector<8x16xf32>
    tpu.vector_store %arg10[%c8_90, %c80_91], %250 {strides = array<i32>} : memref<16x128xf32, #tpu.memory_space<vmem>>, vector<8x16xf32>,
    %252 = vector.extract_strided_slice %152 {offsets = [0, 96], sizes = [8, 16], strides = [1, 1]} : vector<8x128xf32> to vector<8x16xf32>
    %253 = vector.extract_strided_slice %155 {offsets = [96, 0], sizes = [16, 16], strides = [1, 1]} : vector<128x16xf32> to vector<16x16xf32>
    %cst_92 = arith.constant dense<0.000000e+00> : vector<8x16xf32>
    %254 = tpu.matmul %252, %253, %cst_92 {dimension_numbers = #tpu.dot_dimension_numbers<[1], [0], [0], [1], [0, 0, 1, 1], [], []>} : vector<8x16xf32>, vector<16x16xf32>, vector<8x16xf32> -> vector<8x16xf32>
    %cst_93 = arith.constant dense<0xFF800000> : vector<8xf32>
    %255 = vector.multi_reduction <maximumf>, %254, %cst_93 [1] : vector<8x16xf32> to vector<8xf32>
    %256 = vector.shape_cast %255 : vector<8xf32> to vector<8x1xf32>
    %257 = vector.broadcast %256 : vector<8x1xf32> to vector<8x16xf32>
    %258 = arith.subf %254, %257 : vector<8x16xf32>
    %259 = math.exp %258 : vector<8x16xf32>
    %cst_94 = arith.constant dense<0.000000e+00> : vector<8xf32>
    %260 = vector.multi_reduction <add>, %259, %cst_94 [1] : vector<8x16xf32> to vector<8xf32>
    %261 = vector.shape_cast %260 : vector<8xf32> to vector<8x1xf32>
    %262 = tpu.reciprocal %261 {approx = true} : vector<8x1xf32> -> vector<8x1xf32>
    %263 = vector.broadcast %262 : vector<8x1xf32> to vector<8x16xf32>
    %264 = arith.mulf %259, %263 : vector<8x16xf32>
    %265 = vector.extract_strided_slice %154 {offsets = [0, 96], sizes = [16, 16], strides = [1, 1]} : vector<16x128xf32> to vector<16x16xf32>
    %cst_95 = arith.constant dense<0.000000e+00> : vector<8x16xf32>
    %266 = tpu.matmul %264, %265, %cst_95 {dimension_numbers = #tpu.dot_dimension_numbers<[1], [0], [0], [1], [0, 0, 1, 1], [], []>} : vector<8x16xf32>, vector<16x16xf32>, vector<8x16xf32> -> vector<8x16xf32>
    %c8_96 = arith.constant 8 : index
    %c96_97 = arith.constant 96 : index
    %267 = vector.load %arg10[%c8_96, %c96_97] : memref<16x128xf32, #tpu.memory_space<vmem>>, vector<8x16xf32>
    tpu.vector_store %arg10[%c8_96, %c96_97], %266 {strides = array<i32>} : memref<16x128xf32, #tpu.memory_space<vmem>>, vector<8x16xf32>,
    %268 = vector.extract_strided_slice %152 {offsets = [0, 112], sizes = [8, 16], strides = [1, 1]} : vector<8x128xf32> to vector<8x16xf32>
    %269 = vector.extract_strided_slice %155 {offsets = [112, 0], sizes = [16, 16], strides = [1, 1]} : vector<128x16xf32> to vector<16x16xf32>
    %cst_98 = arith.constant dense<0.000000e+00> : vector<8x16xf32>
    %270 = tpu.matmul %268, %269, %cst_98 {dimension_numbers = #tpu.dot_dimension_numbers<[1], [0], [0], [1], [0, 0, 1, 1], [], []>} : vector<8x16xf32>, vector<16x16xf32>, vector<8x16xf32> -> vector<8x16xf32>
    %cst_99 = arith.constant dense<0xFF800000> : vector<8xf32>
    %271 = vector.multi_reduction <maximumf>, %270, %cst_99 [1] : vector<8x16xf32> to vector<8xf32>
    %272 = vector.shape_cast %271 : vector<8xf32> to vector<8x1xf32>
    %273 = vector.broadcast %272 : vector<8x1xf32> to vector<8x16xf32>
    %274 = arith.subf %270, %273 : vector<8x16xf32>
    %275 = math.exp %274 : vector<8x16xf32>
    %cst_100 = arith.constant dense<0.000000e+00> : vector<8xf32>
    %276 = vector.multi_reduction <add>, %275, %cst_100 [1] : vector<8x16xf32> to vector<8xf32>
    %277 = vector.shape_cast %276 : vector<8xf32> to vector<8x1xf32>
    %278 = tpu.reciprocal %277 {approx = true} : vector<8x1xf32> -> vector<8x1xf32>
    %279 = vector.broadcast %278 : vector<8x1xf32> to vector<8x16xf32>
    %280 = arith.mulf %275, %279 : vector<8x16xf32>
    %281 = vector.extract_strided_slice %154 {offsets = [0, 112], sizes = [16, 16], strides = [1, 1]} : vector<16x128xf32> to vector<16x16xf32>
    %cst_101 = arith.constant dense<0.000000e+00> : vector<8x16xf32>
    %282 = tpu.matmul %280, %281, %cst_101 {dimension_numbers = #tpu.dot_dimension_numbers<[1], [0], [0], [1], [0, 0, 1, 1], [], []>} : vector<8x16xf32>, vector<16x16xf32>, vector<8x16xf32> -> vector<8x16xf32>
    %c8_102 = arith.constant 8 : index
    %c112_103 = arith.constant 112 : index
    %283 = vector.load %arg10[%c8_102, %c112_103] : memref<16x128xf32, #tpu.memory_space<vmem>>, vector<8x16xf32>
    tpu.vector_store %arg10[%c8_102, %c112_103], %282 {strides = array<i32>} : memref<16x128xf32, #tpu.memory_space<vmem>>, vector<8x16xf32>,
    %c0_104 = arith.constant 0 : index
    %c0_105 = arith.constant 0 : index
    %284 = vector.load %arg10[%c0_104, %c0_105] : memref<16x128xf32, #tpu.memory_space<vmem>>, vector<16x128xf32>
    %285 = arith.truncf %284 : vector<16x128xf32> to vector<16x128xbf16>
    %c0_106 = arith.constant 0 : index
    %c0_107 = arith.constant 0 : index
    %286 = vector.load %arg5[%c0_106, %c0_107] : memref<128x128xbf16, #tpu.memory_space<vmem>>, vector<128x128xbf16>
    %cst_108 = arith.constant dense<0.000000e+00> : vector<16x128xf32>
    %287 = tpu.matmul %285, %286, %cst_108 {dimension_numbers = #tpu.dot_dimension_numbers<[1], [0], [0], [1], [0, 0, 1, 1], [], []>} : vector<16x128xbf16>, vector<128x128xbf16>, vector<16x128xf32> -> vector<16x128xf32>
    %c0_109 = arith.constant 0 : index
    %c0_110 = arith.constant 0 : index
    %288 = vector.load %arg8[%c0_109, %c0_110] : memref<1x128xf32, #tpu.memory_space<vmem>>, vector<1x128xf32>
    %289 = vector.broadcast %288 : vector<1x128xf32> to vector<16x128xf32>
    %290 = arith.addf %287, %289 : vector<16x128xf32>
    %291 = vector.shape_cast %290 : vector<16x128xf32> to vector<2x8x128xf32>
    %c0_111 = arith.constant 0 : index
    %c0_112 = arith.constant 0 : index
    %c0_113 = arith.constant 0 : index
    %292 = vector.load %arg9[%c0_111, %c0_112, %c0_113] : memref<2x8x128xf32, #tpu.memory_space<vmem>>, vector<2x8x128xf32>
    tpu.vector_store %arg9[%c0_111, %c0_112, %c0_113], %291 {strides = array<i32>} : memref<2x8x128xf32, #tpu.memory_space<vmem>>, vector<2x8x128xf32>,
    return
  }
  func.func @transform_0(%arg0: i32) -> (i32, i32, i32) {
    %c0_i32 = arith.constant 0 : i32
    %c0_i32_0 = arith.constant 0 : i32
    %c0_i32_1 = arith.constant 0 : i32
    return %arg0, %c0_i32, %c0_i32_0 : i32, i32, i32
  }
  func.func @transform_1(%arg0: i32) -> (i32, i32, i32) {
    %c0_i32 = arith.constant 0 : i32
    %c0_i32_0 = arith.constant 0 : i32
    %c0_i32_1 = arith.constant 0 : i32
    return %arg0, %c0_i32, %c0_i32_0 : i32, i32, i32
  }
  func.func @transform_2(%arg0: i32) -> (i32, i32) {
    %c0_i32 = arith.constant 0 : i32
    %c0_i32_0 = arith.constant 0 : i32
    %c0_i32_1 = arith.constant 0 : i32
    return %c0_i32, %c0_i32_0 : i32, i32
  }
  func.func @transform_3(%arg0: i32) -> (i32, i32) {
    %c0_i32 = arith.constant 0 : i32
    %c0_i32_0 = arith.constant 0 : i32
    %c0_i32_1 = arith.constant 0 : i32
    return %c0_i32, %c0_i32_0 : i32, i32
  }
  func.func @transform_4(%arg0: i32) -> (i32, i32) {
    %c0_i32 = arith.constant 0 : i32
    %c0_i32_0 = arith.constant 0 : i32
    %c0_i32_1 = arith.constant 0 : i32
    return %c0_i32, %c0_i32_0 : i32, i32
  }
  func.func @transform_5(%arg0: i32) -> (i32, i32) {
    %c0_i32 = arith.constant 0 : i32
    %c0_i32_0 = arith.constant 0 : i32
    %c0_i32_1 = arith.constant 0 : i32
    return %c0_i32, %c0_i32_0 : i32, i32
  }
  func.func @transform_6(%arg0: i32) -> (i32, i32) {
    %c0_i32 = arith.constant 0 : i32
    %c0_i32_0 = arith.constant 0 : i32
    %c0_i32_1 = arith.constant 0 : i32
    return %c0_i32, %c0_i32_0 : i32, i32
  }
  func.func @transform_7(%arg0: i32) -> (i32, i32) {
    %c0_i32 = arith.constant 0 : i32
    %c0_i32_0 = arith.constant 0 : i32
    %c0_i32_1 = arith.constant 0 : i32
    return %c0_i32, %c0_i32_0 : i32, i32
  }
  func.func @transform_8(%arg0: i32) -> (i32, i32, i32) {
    %c0_i32 = arith.constant 0 : i32
    %c0_i32_0 = arith.constant 0 : i32
    %c0_i32_1 = arith.constant 0 : i32
    return %arg0, %c0_i32, %c0_i32_0 : i32, i32, i32
  }
}

</mosaic_0001>

<bundles_post_ra>
// kernel: tpu_custom_call.1
= control target key start
LH: loop header
LB: loop body
LE: loop exit
PB: predicated region body
PF: predicated region fallthrough
CT: control target
= control target key end

     0   :  { %s5574_s0 = inlined_call_operand.hbm [shape: bf16[4,8,128], index: 0, kind: input, shape index: {}]   ;;  %s5575_s1 = inlined_call_operand.hbm [shape: bf16[4,16,128], index: 1, kind: input, shape index: {}]   ;;  %s5576_s2 = inlined_call_operand.hbm [shape: bf16[128,128], index: 2, kind: input, shape index: {}]   ;;  %s5577_s3 = inlined_call_operand.hbm [shape: bf16[128,256], index: 3, kind: input, shape index: {}]   ;;  %s5578_s4 = inlined_call_operand.hbm [shape: bf16[128,128], index: 4, kind: input, shape index: {}]   ;;  %s5579_s5 = inlined_call_operand.vmem [shape: f32[1,128], index: 5, kind: input, shape index: {}]   ;;  %s5580_s6 = inlined_call_operand.vmem [shape: f32[1,256], index: 6, kind: input, shape index: {}]   ;;  %s5581_s7 = inlined_call_operand.vmem [shape: f32[1,128], index: 7, kind: input, shape index: {}]   ;;  %s5582_s8 = inlined_call_operand.hbm [shape: f32[4,8,128], index: 8, kind: output, shape index: {}]  }
   0x1   :  { %5591 = sst [smem:[#allocation20_spill]] %s5574_s0 }
   0x2   :  { %5592 = sst [smem:[#allocation21_spill]] %s5576_s2 }
   0x3   :  { %5593 = sst [smem:[#allocation22_spill]] %s5577_s3 }
   0x4   :  { %5594 = sst [smem:[#allocation23_spill]] %s5578_s4 }
   0x5   :  { %13 = vsyncpa [#allocation4], 0 }
   0x6   :  { %15 = vsyncpa [#allocation4 + $0x1], 0 }
   0x7   :  { %16 = vsyncpa [#allocation7], 0 }
   0x8   :  { %18 = vsyncpa [#allocation7 + $0x1], 0 }
   0x9   :  { %19 = vsyncpa [#allocation10], 0 }
   0xa   :  { %20 = vsyncpa [#allocation5], 0 }
   0xb   :  { %22 = vsyncpa [#allocation5 + $0x1], 0  ;;  %s4776_s27 = smov 0   ;;  %s4778_s28 = smov 0  }
   0xc   :  { %s4780_s29 = smov 0   ;;  %s4782_s30 = smov 0  }
   0xd LB: > { %5595 = sst [smem:[#allocation18_spill]] %s4703_s29  ;;  %s4797_s9 = sadd.s32 4294967295, %s4707_s30   ;;  %s4707_s30 = sphi %s4782_s30, %s5623_s30   ;;  %s4703_s29 = sphi %s4780_s29, %s5620_s29   ;;  %s4699_s28 = sphi %s4778_s28, %s5622_s28   ;;  %s4695_s27 = sphi %s4776_s27, %s5621_s27  }
   0xe   : > { %s3784_s10 = sadd.s32 4294967294, %s4707_s30   ;;  %p48_p0 = scmp.ne.s32.totalorder %s4699_s28, %s4695_s27 }
   0xf   : > { %p5587_p1 = scmp.eq.s32.totalorder %s4797_s9, 0  ;;  %p224_p2 = scmp.eq.s32.totalorder %s4797_s9, 1 }
  0x10   : > { %p230_p3 = scmp.eq.s32.totalorder %s3784_s10, 1  ;;  %p3785_p5 = scmp.ge.s32.totalorder %s4707_s30, 1 }
  0x11   : > { %p4806_p4 = por %p5587_p1, %p48_p0  ;;  %p237_p7 = scmp.lt.s32.totalorder %s4707_s30, 3 }
  0x12   : > { %p4811_p6 = por %p230_p3, %p48_p0  ;;  %s4709_s14 = smov [#allocation8]  }
  0x13   : > { %s5596_s11 = scalar_select %p4806_p4, 1, 0 }
  0x14   : > { %s5597_s12 = scalar_select %p4811_p6, 1, 0 }
  0x15   : > { %p4816_p8 = pnand %p3785_p5, %p237_p7  ;;  %s249_s15 = sshll.u32 %s4709_s14, 4  ;;  %s250_s15 = int_to_ptr.vmem [resolvable:$true] %s249_s15 }
  0x16   : > { %s4710_s17 = smov [#allocation9]   ;;  %s4508_s19 = scalar_lea.vmem %s250_s15, 1024 }
  0x17   : > { %p4310_p9 = pneg %p4816_p8  ;;  %s262_s18 = sshll.u32 %s4710_s17, 4  ;;  %s263_s18 = int_to_ptr.vmem [resolvable:$true] %s262_s18 }
  0x18   : > { %p4509_p13 = scmp.ne.s32.totalorder %s250_s15, %s4508_s19  ;;  %p4516_p5 = scmp.lt.s32.totalorder %s250_s15, %s250_s15 }
  0x19   : > { %p4825_p11 = pnand %p4310_p9, %p5587_p1  ;;  %p4517_p7 = scmp.lt.s32.totalorder %s4508_s19, %s4508_s19 }
  0x1b   : > { %p4499_p12 = pneg %p4825_p11  ;;  %p4518_p10 = por %p4517_p7, %p4516_p5 }
  0x1d   : > { %p4511_p0 = pnand %p4509_p13, %p4499_p12 }
  0x1f   : > { %p4512_p3 = pneg %p4511_p0 }
  0x21   : > { %p4519_p9 = pnand %p4518_p10, %p4512_p3 }
  0x23   : > { %4522 = shalt.err (!%p4519_p9)
}
  0x24   : > { %s5583_s20 = smov 64   ;;  %s5585_s21 = smov 4  }
  0x25   : > { %s5600_s2 = sld [smem:[#allocation21_spill]]  ;;  %s4534_s24 = scalar_lea.vmem %s263_s18, 2048 }
  0x26   : > { %p4535_p13 = scmp.ne.s32.totalorder %s263_s18, %s4534_s24  ;;  %p4542_p10 = scmp.lt.s32.totalorder %s263_s18, %s263_s18 }
  0x27   : > { %p4543_p3 = scmp.lt.s32.totalorder %s4534_s24, %s4534_s24 }
  0x28   : > { %p4537_p0 = pnand %p4535_p13, %p4499_p12 }
  0x29   : > { %p4544_p7 = por %p4543_p3, %p4542_p10 }
  0x2a   : > { %p4538_p5 = pneg %p4537_p0 }
  0x2b   : > { %4313 = dma.hbm_to_vmem [thread:$0]  (!%p4825_p11), %s5600_s2, 1024, %s250_s15, [#allocation7], %s5583_s20, %s5583_s20, %s5585_s21  }
  0x2c   : > { %p4545_p9 = pnand %p4544_p7, %p4538_p5 }
  0x2e   : > { %4548 = shalt.err (!%p4545_p9)
}
  0x2f   : > { %s4713_s25 = smov 128   ;;  %s4714_s26 = smov 8  }
  0x30   : > { %s5601_s3 = sld [smem:[#allocation22_spill]]  ;;  %s4715_s15 = smov [#allocation11]  }
  0x31   : > { %s275_s17 = sshll.u32 %s4715_s15, 4  ;;  %s4851_s19 = sadd.s32 1, %s4707_s30   ;;  %s276_s17 = int_to_ptr.vmem [resolvable:$true] %s275_s17 }
  0x32   : > { %s4560_s22 = scalar_lea.vmem %s276_s17, 1024  ;;  %p4568_p10 = scmp.lt.s32.totalorder %s276_s17, %s276_s17 }
  0x33   : > { %p4561_p13 = scmp.ne.s32.totalorder %s276_s17, %s4560_s22  ;;  %p4569_p3 = scmp.lt.s32.totalorder %s4560_s22, %s4560_s22 }
  0x35   : > { %p4563_p0 = pnand %p4561_p13, %p4499_p12  ;;  %p4570_p7 = por %p4569_p3, %p4568_p10 }
  0x36   : > { %4316 = dma.hbm_to_vmem [thread:$0]  (!%p4825_p11), %s5601_s3, 2048, %s263_s18, [#allocation10], %s4713_s25, %s4713_s25, %s4714_s26  }
  0x37   : > { %p4564_p5 = pneg %p4563_p0 }
  0x39   : > { %p4571_p9 = pnand %p4570_p7, %p4564_p5 }
  0x3b   : > { %4574 = shalt.err (!%p4571_p9)
}
  0x3c   : > { %s5602_s4 = sld [smem:[#allocation23_spill]]  ;;  %s32_s24 = ssub.s32 %s4707_s30, %s4851_s19 }
  0x3d   : > { %s35_s16 = sadd.s32 1, %s4703_s29  ;;  %p33_p12 = scmp.eq.s32.totalorder %s32_s24, 0 }
  0x3e   : > { %p42_p13 = scmp.ne.s32.totalorder %s4703_s29, %s4699_s28  ;;  %p43_p0 = scmp.eq.s32.totalorder %s4707_s30, 0 }
  0x3f   : > { %p4334_p5 = scmp.lt.s32.totalorder %s4707_s30, 2  ;;  %s4881_s10 = sand.u32 1, %s4703_s29  }
  0x40   : > { %s4872_s25 = scalar_select %p33_p12, %s4703_s29, %s35_s16  }
  0x41   : > { %p44_p10 = por %p43_p0, %p42_p13  ;;  %p4876_p3 = por %p224_p2, %p42_p13 }
  0x42   : > { %4319 = dma.hbm_to_vmem [thread:$0]  (!%p4825_p11), %s5602_s4, 1024, %s276_s17, [#allocation10], %s5583_s20, %s5583_s20, %s5585_s21  }
  0x43   : > { %5603 = sst [smem:[#allocation19_spill]] %s4872_s25  ;;  %s3910_s14 = sshll.u32 %s4707_s30, 7 }
  0x44   : > { %s5604_s26 = scalar_select %p4876_p3, 1, 0 }
  0x45   : > { %s3790_s15 = sshll.u32 %s4881_s10, 3  ;;  %s5605_s0 = sld [smem:[#allocation20_spill]] }
  0x46   : > { %s302_s23 = scalar_lea.vmem [#allocation3], %s3790_s15  ;;  %p4890_p2 = pnand %p4334_p5, %p44_p10 }
  0x47   : > { %s309_s24 = sshll.u32 %s302_s23, 4  ;;  %s4894_s24 = int_to_ptr.vmem [resolvable:$true] %s309_s24 }
  0x48   : > { %p4577_p7 = pneg %p4890_p2 }
  0x4b   : > { %s4888_s18 = scalar_lea.hbm %s5605_s0, %s3910_s14  ;;  %s4580_s17 = scalar_lea.hbm %s5605_s0, 256 }
  0x4c   : > { %s4575_s2 = scalar_lea.hbm %s4888_s18, 128  ;;  %p4581_p13 = scmp.lt.s32.totalorder %s4888_s18, %s5605_s0 }
  0x4d   : > { %p4576_p11 = scmp.ne.s32.totalorder %s4888_s18, %s4575_s2  ;;  %p4582_p0 = scmp.lt.s32.totalorder %s4580_s17, %s4575_s2 }
  0x4f   : > { %p4578_p9 = pnand %p4577_p7, %p4576_p11  ;;  %p4583_p5 = por %p4582_p0, %p4581_p13 }
  0x51   : > { %p4579_p12 = pneg %p4578_p9 }
  0x53   : > { %p4584_p10 = pnand %p4583_p5, %p4579_p12 }
  0x55   : > { %4587 = shalt.err (!%p4584_p10)
}
  0x56   : > { %s4588_s20 = scalar_lea.vmem %s4894_s24, 128  ;;  %s4716_s14 = smov [#allocation3]  }
  0x57   : > { %p4589_p1 = scmp.ne.s32.totalorder %s4894_s24, %s4588_s20  ;;  %s4593_s15 = sshll.u32 %s4716_s14, 4  ;;  %s4594_s15 = int_to_ptr.vmem [resolvable:$false] %s4593_s15 }
  0x58   : > { %s4595_s21 = scalar_lea.vmem %s4594_s15, 256  ;;  %p4596_p6 = scmp.lt.s32.totalorder %s4894_s24, %s4594_s15 }
  0x59   : > { %p4591_p11 = pnand %p4589_p1, %p4577_p7  ;;  %p4597_p3 = scmp.lt.s32.totalorder %s4595_s21, %s4588_s20 }
  0x5b   : > { %p4592_p9 = pneg %p4591_p11  ;;  %p4598_p4 = por %p4597_p3, %p4596_p6 }
  0x5d   : > { %p4599_p13 = pnand %p4598_p4, %p4592_p9 }
  0x5f   : > { %4602 = shalt.err (!%p4599_p13)
}
  0x60   : > { %s5607_s2 = smov 4   ;;  %s5608_s17 = smov 64  }
  0x61   : > { %s5609_s22 = scalar_lea.sflag [#allocation4], %s4881_s10  ;;  %s3793_s23 = sshll.u32 %s4881_s10, 4 }
  0x62   : > { %4323 = dma.hbm_to_vmem [thread:$0]  (!%p4890_p2), %s4888_s18, 128, %s4894_s24, %s5609_s22, %s5608_s17, %s5608_s17, %s5607_s2  }
  0x63   : > { %s3912_s14 = sshll.u32 %s4707_s30, 8  ;;  %s323_s0 = scalar_lea.vmem [#allocation6], %s3793_s23 }
  0x64   : > { %s4932_s15 = scalar_lea.hbm %s5575_s1, %s3912_s14  ;;  %s331_s3 = sshll.u32 %s323_s0, 4  ;;  %s4934_s3 = int_to_ptr.vmem [resolvable:$true] %s331_s3 }
  0x65   : > { %s5610_s4 = sand.u32 1, %s4707_s30   ;;  %s4603_s29 = scalar_lea.hbm %s4932_s15, 256 }
  0x66   : > { %s320_s25 = scalar_lea.sflag [#allocation7], %s5610_s4  ;;  %p4604_p1 = scmp.ne.s32.totalorder %s4932_s15, %s4603_s29 }
  0x67   : > { %s4608_s24 = scalar_lea.hbm %s5575_s1, 512  ;;  %p4609_p3 = scmp.lt.s32.totalorder %s4932_s15, %s5575_s1 }
  0x68   : > { %p4606_p4 = pnand %p4604_p1, %p4577_p7  ;;  %p4610_p12 = scmp.lt.s32.totalorder %s4608_s24, %s4603_s29 }
  0x6a   : > { %p4607_p6 = pneg %p4606_p4  ;;  %p4611_p0 = por %p4610_p12, %p4609_p3 }
  0x6c   : > { %p4612_p5 = pnand %p4611_p0, %p4607_p6 }
  0x6e   : > { %4615 = shalt.err (!%p4612_p5)
}
  0x6f   : > { %s4616_s0 = scalar_lea.vmem %s4934_s3, 256  ;;  %s4717_s4 = smov [#allocation6]  }
  0x70   : > { %p4617_p10 = scmp.ne.s32.totalorder %s4934_s3, %s4616_s0  ;;  %s4621_s23 = sshll.u32 %s4717_s4, 4  ;;  %s4622_s23 = int_to_ptr.vmem [resolvable:$false] %s4621_s23 }
  0x71   : > { %s4623_s20 = scalar_lea.vmem %s4622_s23, 512  ;;  %p4624_p13 = scmp.lt.s32.totalorder %s4934_s3, %s4622_s23 }
  0x72   : > { %p4619_p11 = pnand %p4617_p10, %p4577_p7  ;;  %p4625_p1 = scmp.lt.s32.totalorder %s4623_s20, %s4616_s0 }
  0x74   : > { %p4620_p9 = pneg %p4619_p11  ;;  %p4626_p4 = por %p4625_p1, %p4624_p13 }
  0x76   : > { %p4627_p3 = pnand %p4626_p4, %p4620_p9 }
  0x78   : > { %4630 = shalt.err (!%p4627_p3)
}
  0x79   : > { %4326 = dma.hbm_to_vmem [thread:$0]  (!%p4890_p2), %s4932_s15, 256, %s4934_s3, %s320_s25, %s5608_s17, %s5608_s17, %s5607_s2  }
  0x7a   : > { %343 = sbr.rel (%p4816_p8) target bundleno = 7702 (0x1e16), region = 52  ;;  %s4966_s29 = sand.u32 (!%p4816_p8), 1, %s4699_s28  }
  0x7b   : > { %s3798_s21 = sshll.u32 (!%p4816_p8), %s4966_s29, 3  ;;  %s346_s10 = scalar_lea.sflag (!%p4816_p8), [#allocation4], %s4966_s29 }
  0x7c   : > { %s4970_s18 = scalar_lea.vmem (!%p4816_p8), [#allocation3], %s3798_s21  ;;  %p5611_p7 = scmp.ne.s32.totalorder (!%p4816_p8), %s5596_s11, 0 }
  0x7f   : > { %4674 = dma.done.wait (%p5611_p7), %s346_s10, 128  }
  0x80   : > { %4676 = vsyncadd (%p5611_p7), %s346_s10, 4294967168  ;;  %s354_s3 = sand.u32 1, %s4797_s9   ;;  %s3799_s13 = sshll.u32 %s4966_s29, 4 }
  0x81   : > { %s355_s25 = scalar_lea.sflag [#allocation7], %s354_s3  ;;  %s4980_s16 = scalar_lea.vmem [#allocation6], %s3799_s13 }
  0x82   : > { %4678 = dma.done.wait (%p5611_p7), %s355_s25, 256  }
  0x83   : > { %4680 = vsyncadd (%p5611_p7), %s355_s25, 4294967040  ;;  %p5612_p8 = scmp.eq.s32.totalorder %s4797_s9, 0 }
  0x85   : > { %4682 = dma.done.wait (%p5612_p8), [#allocation7], 1024   ;;  %p5613_p2 = pmov %p5612_p8 }
  0x87   : > { %4684 = vsyncadd (%p5613_p2), [#allocation7], 4294966272  ;;  %p5614_p6 = pmov %p5613_p2 }
  0x88   : > { %p5615_p12 = pmov %p5613_p2 }
  0x89   : > { %4686 = dma.done.wait (%p5614_p6), [#allocation10], 3072  }
  0x8a   : > { %4688 = vsyncadd (%p5615_p12), [#allocation10], 4294964224  ;;  %v4718_v0 = vmov 0.0   ;;  %vm4719_vm0 = vmmov 0   ;;  %v4720_v1 = vmov 0   ;;  %v4390_v2 = vld [vmem:[#allocation8 + $0x38] sm:$0xff]   ;;  %v554_v29 = vlaneseq }
  0x8b   : > { %4028 = vmatprep.subr.bf16.mxu0 %v4718_v0  ;;  %4044 = vmatprep.mubr.msk.bf16.mxu0 %vm4719_vm0, %v4718_v0  ;;  %v4391_v3 = vld [vmem:[#allocation9 + $0x74] ss:$8 sps:$4 sm:$0xff]   ;;  %v4393_v4 = vld [vmem:[#allocation9 + $0x70] ss:$8 sps:$4 sm:$0xff]   ;;  %v4395_v6 = vld [vmem:[#allocation9 + $0x64] ss:$8 sps:$4 sm:$0xff]  }
  0x8c   : > { %688 = vmatprep.mubr.bf16.mxu1 %v4720_v1  ;;  %4029 = vmatpush3.bf16.msra.mxu0 %v4390_v2  ;;  %v4394_v5 = vld [vmem:[#allocation8 + $0x30] sm:$0xff]   ;;  %v4397_v7 = vld [vmem:[#allocation9 + $0x60] ss:$8 sps:$4 sm:$0xff]   ;;  %v4403_v11 = vld [vmem:[#allocation9 + $0x44] ss:$8 sps:$4 sm:$0xff]   ;;  %v555_v30 = vshrl.u32 %v554_v29, 7 }
  0x8d   : > { %656 = vmatprep.subr.bf16.mxu1 %v4391_v3  ;;  %4030 = vmatprep.subr.bf16.mxu0 %v4718_v0  ;;  %v4398_v8 = vld [vmem:[#allocation8 + $0x28] sm:$0xff]   ;;  %v4399_v9 = vld [vmem:[#allocation9 + $0x54] ss:$8 sps:$4 sm:$0xff]   ;;  %v4401_v10 = vld [vmem:[#allocation9 + $0x50] ss:$8 sps:$4 sm:$0xff]   ;;  %s4721_s24 = smov 112  }
  0x8e   : > { %657 = vmatpush1.bf16.msra.mxu1 %v4393_v4  ;;  %v4402_v12 = vld [vmem:[#allocation8 + $0x20] sm:$0xff]   ;;  %v4407_v14 = vld [vmem:[#allocation9 + $0x34] ss:$8 sps:$4 sm:$0xff]   ;;  %v4409_v16 = vld [vmem:[#allocation9 + $0x30] ss:$8 sps:$4 sm:$0xff]   ;;  %v556_v34 = vsub.s32 0, %v555_v30 }
  0x8f   : > { %658 = vmatprep.subr.bf16.mxu1 %v4395_v6  ;;  %v4405_v13 = vld [vmem:[#allocation9 + $0x40] ss:$8 sps:$4 sm:$0xff]   ;;  %v4406_v15 = vld [vmem:[#allocation8 + $0x18] sm:$0xff]   ;;  %v4411_v17 = vld [vmem:[#allocation9 + $0x24] ss:$8 sps:$4 sm:$0xff]   ;;  %vm710_vm1 = vcmask 130048  }
  0x90   : > { %4031 = vmatpush3.bf16.msra.mxu0 %v4394_v5  ;;  %v4410_v18 = vld [vmem:[#allocation8 + $0x10] sm:$0xff]   ;;  %v4413_v19 = vld [vmem:[#allocation9 + $0x20] ss:$8 sps:$4 sm:$0xff]   ;;  %v4419_v23 = vld [vmem:[#allocation9 + $0x4] ss:$8 sps:$4 sm:$0xff]   ;;  %v560_v46 = vsub.s32 1, %v555_v30 }
  0x91   : > { %4032 = vmatprep.subr.bf16.mxu0 %v4718_v0  ;;  %v4414_v20 = vld [vmem:[#allocation8 + $0x8] sm:$0xff]   ;;  %v4415_v21 = vld [vmem:[#allocation9 + $0x14] ss:$8 sps:$4 sm:$0xff]   ;;  %v4417_v22 = vld [vmem:[#allocation9 + $0x10] ss:$8 sps:$4 sm:$0xff]   ;;  %s4722_s22 = smov 96  }
  0x92   : > { %659 = vmatpush1.bf16.msra.mxu1 %v4397_v7  ;;  %v4418_v24 = vld [vmem:[#allocation8] sm:$0xff]   ;;  %v4422_v26 = vld [vmem:[%s4970_s18] sm:$0xff]   ;;  %s4723_s14 = smov 80   ;;  %s4724_s0 = smov 64   ;;  %vm1053_vm2 = vcmask 261248   ;;  %vm1231_vm3 = vcmask 392448  }
  0x93   : > { %660 = vmatprep.subr.bf16.mxu1 %v4399_v9  ;;  %v4421_v25 = vld [vmem:[#allocation9] ss:$8 sps:$4 sm:$0xff]   ;;  %s4725_s4 = smov 48   ;;  %s4726_s23 = smov 32   ;;  %vm1409_vm4 = vcmask 523648   ;;  %vm1587_vm5 = vcmask 654848  }
  0x94   : > { %4033 = vmatpush3.bf16.msra.mxu0 %v4398_v8  ;;  %v4423_v27 = vld [vmem:[%s4980_s16] sm:$0xff]   ;;  %v4424_v28 = vld [vmem:[%s4980_s16 + $0x8] sm:$0xff]   ;;  %s4727_s20 = smov 16   ;;  %vm1765_vm6 = vcmask 786048   ;;  %vm1943_vm7 = vcmask 917248   ;;  %vm2121_vm8 = vcmask 1048448  }
  0x95   : > { %4034 = vmatprep.subr.bf16.mxu0 %v4718_v0  ;;  %v3804_v31 = vld [vmem:[%s5579_s5] ss:$0 sm:$0xff]  ;;  %s407_s18 = scalar_lea.vmem [#allocation12], %s3799_s13  ;;  %s3913_s25 = sshll.u32 %s4797_s9, 8 }
  0x96   : > { %661 = vmatpush1.bf16.msra.mxu1 %v4401_v10  ;;  %v552_v35 = vld [vmem:[%s5580_s6] sm:$0x3]  ;;  %s3660_s3 = sshll.u32 %s407_s18, 4  ;;  %s5531_s2 = scalar_lea.hbm %s5582_s8, %s3913_s25  ;;  %s5526_s3 = int_to_ptr.vmem [resolvable:$true] %s3660_s3 }
  0x97   : > { %662 = vmatprep.subr.bf16.mxu1 %v4403_v11  ;;  %v5023_v41 = vrot.slane %v552_v35, %v556_v34  ;;  %v5042_v48 = vrot.slane %v552_v35, %v560_v46  ;;  %s3647_s13 = scalar_lea.sflag [#allocation5], %s4966_s29  ;;  %s4631_s17 = scalar_lea.vmem %s5526_s3, 256 }
  0x98   : > { %4035 = vmatpush3.bf16.msra.mxu0 %v4402_v12  ;;  %p4632_p0 = scmp.ne.s32.totalorder %s5526_s3, %s4631_s17  ;;  %p5616_p5 = scmp.ne.s32.totalorder %s5604_s26, 0 }
  0x99   : > { %4036 = vmatprep.subr.bf16.mxu0 %v4718_v0  ;;  %s4728_s9 = smov [#allocation12]  }
  0x9a   : > { %663 = vmatpush1.bf16.msra.mxu1 %v4405_v13  ;;  %p4633_p10 = pnand %p4632_p0, %p5616_p5  ;;  %s4635_s15 = sshll.u32 %s4728_s9, 4  ;;  %s4636_s15 = int_to_ptr.vmem [resolvable:$false] %s4635_s15 }
  0x9b   : > { %664 = vmatprep.subr.bf16.mxu1 %v4407_v14  ;;  %p4638_p9 = scmp.lt.s32.totalorder %s5526_s3, %s4636_s15 }
  0x9c   : > { %4037 = vmatpush3.bf16.msra.mxu0 %v4406_v15  ;;  %p4634_p11 = pneg %p4633_p10 }
  0x9d   : > { %4038 = vmatprep.subr.bf16.mxu0 %v4718_v0 }
  0x9e   : > { %665 = vmatpush1.bf16.msra.mxu1 %v4409_v16 }
  0x9f   : > { %666 = vmatprep.subr.bf16.mxu1 %v4411_v17 }
  0xa0   : > { %4039 = vmatpush3.bf16.msra.mxu0 %v4410_v18 }
  0xa1   : > { %4040 = vmatprep.subr.bf16.mxu0 %v4718_v0 }
  0xa2   : > { %667 = vmatpush1.bf16.msra.mxu1 %v4413_v19 }
  0xa3   : > { %668 = vmatprep.subr.bf16.mxu1 %v4415_v21 }
  0xa4   : > { %4041 = vmatpush3.bf16.msra.mxu0 %v4414_v20 }
  0xa5   : > { %4042 = vmatprep.subr.bf16.mxu0 %v4718_v0 }
  0xa6   : > { %669 = vmatpush1.bf16.msra.mxu1 %v4417_v22 }
  0xa7   : > { %670 = vmatprep.subr.bf16.mxu1 %v4419_v23 }
  0xa8   : > { %4043 = vmatpush3.bf16.msra.mxu0 %v4418_v24 }
  0xa9   : > { %4048 = vmatprep.subr.mxu0 %v4718_v0 }
  0xaa   : > { %671 = vmatpush1.bf16.msra.mxu1 %v4421_v25 }
  0xab   : > { %4045 = vmatmul.mubr.bf16.vlgmr.msra.gmra.mxu0 %v4422_v26  ;;  %4062 = vmatprep.subr.mxu1 %v4718_v0 }
  0xac   : > { %4052 = vmatprep.mubr.msk.f32.mxu0 %vm4719_vm0, %v4718_v0 }
  0xad   : > { %689 = vmatmul.mubr.bf16.vlgmr.msra.gmra.mxu1 %v4423_v27 }
  0xae   : > { %698 = vmatprep.mubr.bf16.mxu1 %v4720_v1 }
  0xb5   : > { %699 = vmatmul.mubr.bf16.gmra.mxu1 %v4424_v28 }
  0xb6   : > { %4066 = vmatprep.mubr.msk.f32.mxu1 %vm4719_vm0, %v4718_v0 }
 0x16b   : > { %v529_v32 = vpop.f32.mrf.mxu0 }
 0x16c   : > { %v530_v33 = vadd.f32 %v3804_v31, %v529_v32 }
 0x16d   : > { %v690_v36 = vpop.f32.mrf.mxu1  ;;  %v4046_v37 = vpop.f32.mrf.mxu0 }
 0x16e   : > { %v5021_v38 = vmul.f32 0.25, %v530_v33  ;;  %v5040_v47 = vadd.f32 %v690_v36, %v5023_v41 }
 0x16f   : > { %v692_v39 = vpop.f32.mrf.mxu1  ;;  %v532_v40 = vpop.f32.mrf.mxu0 }
 0x170   : > { %875 = vrot.lane.b32.xlu1 %v5021_v38, %s4721_s24  ;;  %v5027_v42 = vadd.f32 %v3804_v31, %v532_v40  ;;  %v5055_v51 = vadd.f32 %v692_v39, %v5042_v48 }
 0x171   : > { %v694_v43 = vpop.f32.mrf.mxu1  ;;  %v4047_v44 = vpop.f32.mrf.mxu0 }
 0x172   : > { %v5030_v45 = vadd.f32 %v694_v43, %v5023_v41 }
 0x173   : > { %v696_v49 = vpop.f32.mrf.mxu1 }
 0x174   : > { %879 = vrot.lane.b32.xlu0 %v5030_v45, %s4721_s24  ;;  %4049 = vmatpush3.xpose.msk.msra.mxu0 %vm710_vm1, %v5030_v45  ;;  %v5052_v50 = vadd.f32 %v696_v49, %v5042_v48 }
 0x175   : > { %1059 = vrot.lane.b32.xlu1 %v5030_v45, %s4722_s22  ;;  %4050 = vmatprep.subr.mxu0 %v4718_v0  ;;  %v5087_v60 = vpop.f32.mrf.mxu1 }
 0x177   : > { %v5089_v61 = vpop.f32.mrf.mxu1 }
 0x178   : > { %877 = vrot.lane.b32.xlu0 %v5040_v47, %s4721_s24  ;;  %4051 = vmatpush3.xpose.msk.msra.mxu0 %vm710_vm1, %v5040_v47 }
 0x179   : > { %1055 = vrot.lane.b32.xlu1 %v5021_v38, %s4722_s22  ;;  %4055 = vmatprep.subr.mxu0 %v4718_v0  ;;  %v5091_v62 = vpop.f32.mrf.mxu1 }
 0x17b   : > { %4053 = vmatmul.mubr.msk.f32.vlgmr.msra.gmra.mxu0 %vm710_vm1, %v5021_v38  ;;  %v5093_v63 = vpop.f32.mrf.mxu1 }
 0x17c   : > { %1057 = vrot.lane.b32.xlu0 %v5040_v47, %s4722_s22  ;;  %4056 = vmatpush3.msra.mxu0 %v5052_v50 }
 0x17d   : > { %1148 = vrot.lane.b32.xlu1 %v5055_v51, %s4722_s22  ;;  %4057 = vmatprep.subr.mxu0 %v4718_v0 }
 0x17e   : > { %4058 = vmatpush3.msra.mxu0 %v5055_v51  ;;  %4059 = vmatprep.mubr.msk.f32.mxu0 %vm4719_vm0, %v4718_v0 }
 0x17f   : > { %4069 = vmatprep.subr.mxu0 %v4718_v0 }
 0x181   : > { %1235 = vrot.lane.b32.xlu1 %v5040_v47, %s4723_s14 }
 0x1e2   : > { %v876_v53 = vpop.permute.xlu1 %875 }
 0x1e6   : > { %v880_v52 = vpop.permute.xlu0 %879 }
 0x1e7   : > { %4063 = vmatpush3.xpose.msk.msra.mxu1 %vm710_vm1, %v880_v52  ;;  %v1060_v55 = vpop.permute.xlu1 %1059 }
 0x1e8   : > { %4064 = vmatprep.subr.mxu1 %v4718_v0 }
 0x1ea   : > { %v878_v54 = vpop.permute.xlu0 %877 }
 0x1eb   : > { %4065 = vmatpush3.xpose.msk.msra.mxu1 %vm710_vm1, %v878_v54  ;;  %v1056_v57 = vpop.permute.xlu1 %1055 }
 0x1ec   : > { %4076 = vmatprep.subr.mxu1 %v4718_v0 }
 0x1ee   : > { %4067 = vmatmul.mubr.msk.f32.vlgmr.msra.gmra.mxu1 %vm710_vm1, %v876_v53  ;;  %v1058_v56 = vpop.permute.xlu0 %1057 }
 0x1ef   : > { %4077 = vmatpush3.xpose.msk.msra.mxu1 %vm710_vm1, %v1060_v55  ;;  %4080 = vmatprep.mubr.msk.f32.mxu1 %vm4719_vm0, %v4718_v0  ;;  %v1149_v10 = vpop.permute.xlu1 %1148 }
 0x1f0   : > { %4078 = vmatprep.subr.mxu1 %v4718_v0 }
 0x1f3   : > { %4079 = vmatpush3.xpose.msk.msra.mxu1 %vm710_vm1, %v1058_v56  ;;  %v1236_v13 = vpop.permute.xlu1 %1235 }
 0x1f4   : > { %4083 = vmatprep.subr.mxu1 %v4718_v0 }
 0x1f6   : > { %4081 = vmatmul.mubr.msk.f32.vlgmr.msra.gmra.mxu1 %vm710_vm1, %v1056_v57 }
 0x1f7   : > { %4087 = vmatprep.mubr.msk.f32.mxu1 %vm4719_vm0, %v4718_v0 }
 0x23b   : > { %v5085_v58 = vpop.f32.mrf.mxu0 }
 0x23c   : > { %v790_v39 = vsel %vm710_vm1, %v5085_v58, -inf }
 0x23d   : > { %v4054_v59 = vpop.f32.mrf.mxu0 }
 0x2ae   : > { %v5095_v1 = vpop.f32.mrf.mxu1 }
 0x2af   : > { %v957_v29 = vsel %vm710_vm1, %v5095_v1, -inf }
 0x2b0   : > { %v4068_v2 = vpop.f32.mrf.mxu1 }
 0x2b6   : > { %v1133_v3 = vpop.f32.mrf.mxu1 }
 0x2b7   : > { %v1137_v4 = vsel %vm710_vm1, %v1133_v3, -inf }
 0x2b8   : > { %1138 = vmax.xlane.f32.xlu0 %v1137_v4  ;;  %v4082_v5 = vpop.f32.mrf.mxu1 }
 0x2ce   : > { %1150 = vrot.lane.b32.xlu0 %v5052_v50, %s4722_s22 }
 0x2d2   : > { %1237 = vrot.lane.b32.xlu0 %v5030_v45, %s4723_s14 }
 0x2d6   : > { %1233 = vrot.lane.b32.xlu0 %v5021_v38, %s4723_s14 }
 0x2da   : > { %1413 = vrot.lane.b32.xlu0 %v5040_v47, %s4724_s0 }
 0x341   : > { %v1139_v6 = vpop.xlane.xlu0 %1138 }
 0x342   : > { %v1140_v7 = vsub.f32 %v1133_v3, %v1139_v6 }
 0x344   : > { %v1141_v8 = vmul.f32 1.442695, %v1140_v7 }
 0x345   : > { %v1151_v9 = vpop.permute.xlu0 %1150 }
 0x346   : > { %4433 = vpow2.f32 %v1141_v8  ;;  %4084 = vmatpush3.msra.mxu1 %v1151_v9 }
 0x347   : > { %4085 = vmatprep.subr.mxu1 %v4718_v0 }
 0x348   : > { %4086 = vmatpush3.msra.mxu1 %v1149_v10 }
 0x349   : > { %4090 = vmatprep.subr.mxu1 %v4718_v0  ;;  %v1238_v17 = vpop.permute.xlu0 %1237 }
 0x34d   : > { %v1234_v18 = vpop.permute.xlu0 %1233 }
 0x351   : > { %v1414_v20 = vpop.permute.xlu0 %1413 }
 0x353   : > { %v4434_v11 = vpop.eup %4433 }
 0x354   : > { %v1143_v12 = vsel %vm710_vm1, %v4434_v11, 0.0 }
 0x355   : > { %1144 = vadd.xlane.f32.xlu1 %v1143_v12 }
 0x366   : > { %1415 = vrot.lane.b32.xlu1 %v5030_v45, %s4724_s0 }
 0x36a   : > { %1411 = vrot.lane.b32.xlu1 %v5021_v38, %s4724_s0 }
 0x36e   : > { %1504 = vrot.lane.b32.xlu1 %v5055_v51, %s4724_s0 }
 0x3de   : > { %v1145_v14 = vpop.xlane.xlu1 %1144 }
 0x3df   : > { %4435 = vrcp.f32 %v1145_v14 }
 0x3e2   : > { %v1416_v19 = vpop.permute.xlu1 %1415 }
 0x3e6   : > { %v1412_v21 = vpop.permute.xlu1 %1411 }
 0x3ea   : > { %v1505_v35 = vpop.permute.xlu1 %1504 }
 0x3ec   : > { %v4436_v15 = vpop.eup %4435 }
 0x3ed   : > { %v1147_v16 = vmul.f32 %v4436_v15, %v4434_v11 }
 0x3ef   : > { %4088 = vmatmul.mubr.msk.f32.vlgmr.msra.gmra.mxu1 %vm710_vm1, %v1147_v16 }
 0x3f0   : > { %4091 = vmatpush3.xpose.msk.msra.mxu1 %vm710_vm1, %v1238_v17  ;;  %4094 = vmatprep.mubr.msk.f32.mxu1 %vm4719_vm0, %v4718_v0 }
 0x3f1   : > { %4092 = vmatprep.subr.mxu1 %v4718_v0 }
 0x3f4   : > { %4093 = vmatpush3.xpose.msk.msra.mxu1 %vm710_vm1, %v1236_v13 }
 0x3f5   : > { %4104 = vmatprep.subr.mxu1 %v4718_v0 }
 0x3f7   : > { %4095 = vmatmul.mubr.msk.f32.vlgmr.msra.gmra.mxu1 %vm710_vm1, %v1234_v18 }
 0x3f8   : > { %4105 = vmatpush3.xpose.msk.msra.mxu1 %vm710_vm1, %v1416_v19  ;;  %4108 = vmatprep.mubr.msk.f32.mxu1 %vm4719_vm0, %v4718_v0 }
 0x3f9   : > { %4106 = vmatprep.subr.mxu1 %v4718_v0 }
 0x3fc   : > { %4107 = vmatpush3.xpose.msk.msra.mxu1 %vm710_vm1, %v1414_v20 }
 0x3fd   : > { %4111 = vmatprep.subr.mxu1 %v4718_v0 }
 0x3ff   : > { %4109 = vmatmul.mubr.msk.f32.vlgmr.msra.gmra.mxu1 %vm710_vm1, %v1412_v21 }
 0x400   : > { %4115 = vmatprep.mubr.msk.f32.mxu1 %vm4719_vm0, %v4718_v0 }
 0x4af   : > { %v5132_v22 = vpop.f32.mrf.mxu1 }
 0x4b1   : > { %v4089_v23 = vpop.f32.mrf.mxu1 }
 0x4b7   : > { %v1311_v24 = vpop.f32.mrf.mxu1 }
 0x4b8   : > { %v1315_v30 = vsel %vm710_vm1, %v1311_v24, -inf }
 0x4b9   : > { %v4096_v25 = vpop.f32.mrf.mxu1 }
 0x4bf   : > { %v1489_v26 = vpop.f32.mrf.mxu1 }
 0x4c0   : > { %v1493_v27 = vsel %vm710_vm1, %v1489_v26, -inf }
 0x4c1   : > { %1494 = vmax.xlane.f32.xlu0 %v1493_v27  ;;  %v4110_v28 = vpop.f32.mrf.mxu1 }
 0x4d7   : > { %1506 = vrot.lane.b32.xlu0 %v5052_v50, %s4724_s0 }
 0x4db   : > { %1593 = vrot.lane.b32.xlu0 %v5030_v45, %s4725_s4 }
 0x4df   : > { %1589 = vrot.lane.b32.xlu0 %v5021_v38, %s4725_s4 }
 0x4fe   : > { %958 = vmax.xlane.f32.xlu0 %v957_v29 }
 0x502   : > { %1316 = vmax.xlane.f32.xlu0 %v1315_v30 }
 0x54a   : > { %v1495_v31 = vpop.xlane.xlu0 %1494 }
 0x54b   : > { %v1496_v32 = vsub.f32 %v1489_v26, %v1495_v31 }
 0x54d   : > { %v1497_v33 = vmul.f32 1.442695, %v1496_v32 }
 0x54e   : > { %v1507_v34 = vpop.permute.xlu0 %1506 }
 0x54f   : > { %4437 = vpow2.f32 %v1497_v33  ;;  %4112 = vmatpush3.msra.mxu1 %v1507_v34 }
 0x550   : > { %4113 = vmatprep.subr.mxu1 %v4718_v0 }
 0x551   : > { %4114 = vmatpush3.msra.mxu1 %v1505_v35 }
 0x552   : > { %4118 = vmatprep.subr.mxu1 %v4718_v0  ;;  %v1594_v46 = vpop.permute.xlu0 %1593 }
 0x556   : > { %v1590_v52 = vpop.permute.xlu0 %1589 }
 0x55c   : > { %v4438_v36 = vpop.eup %4437 }
 0x55d   : > { %v1499_v37 = vsel %vm710_vm1, %v4438_v36, 0.0 }
 0x55e   : > { %1500 = vadd.xlane.f32.xlu1 %v1499_v37 }
 0x56f   : > { %1591 = vrot.lane.b32.xlu1 %v5040_v47, %s4725_s4 }
 0x587   : > { %v959_v53 = vpop.xlane.xlu0 %958 }
 0x58b   : > { %v1317_v54 = vpop.xlane.xlu0 %1316 }
 0x58c   : > { %v1318_v55 = vsub.f32 %v1311_v24, %v1317_v54 }
 0x58e   : > { %v1319_v59 = vmul.f32 1.442695, %v1318_v55 }
 0x593   : > { %791 = vmax.xlane.f32.xlu1 %v790_v39 }
 0x5e7   : > { %v1501_v40 = vpop.xlane.xlu1 %1500 }
 0x5e8   : > { %4439 = vrcp.f32 %v1501_v40 }
 0x5eb   : > { %v1592_v49 = vpop.permute.xlu1 %1591 }
 0x5f5   : > { %v4440_v43 = vpop.eup %4439 }
 0x5f6   : > { %v1503_v44 = vmul.f32 %v4440_v43, %v4438_v36 }
 0x5f8   : > { %4116 = vmatmul.mubr.msk.f32.vlgmr.msra.gmra.mxu1 %vm710_vm1, %v1503_v44 }
 0x5f9   : > { %4119 = vmatpush3.xpose.msk.msra.mxu1 %vm710_vm1, %v1594_v46  ;;  %4122 = vmatprep.mubr.msk.f32.mxu1 %vm4719_vm0, %v4718_v0 }
 0x5fa   : > { %4120 = vmatprep.subr.mxu1 %v4718_v0 }
 0x5fd   : > { %4121 = vmatpush3.xpose.msk.msra.mxu1 %vm710_vm1, %v1592_v49 }
 0x5fe   : > { %4139 = vmatprep.subr.mxu1 %v4718_v0 }
 0x600   : > { %4123 = vmatmul.mubr.msk.f32.vlgmr.msra.gmra.mxu1 %vm710_vm1, %v1590_v52 }
 0x601   : > { %4143 = vmatprep.mubr.msk.f32.mxu1 %vm4719_vm0, %v4718_v0 }
 0x61c   : > { %v792_v56 = vpop.xlane.xlu1 %791 }
 0x61d   : > { %v793_v57 = vsub.f32 %v5085_v58, %v792_v56  ;;  %v960_v58 = vsub.f32 %v5095_v1, %v959_v53 }
 0x61f   : > { %v794_v2 = vmul.f32 1.442695, %v793_v57  ;;  %v961_v7 = vmul.f32 1.442695, %v960_v58 }
 0x621   : > { %4441 = vpow2.f32 %v794_v2 }
 0x622   : > { %4443 = vpow2.f32 %v1319_v59 }
 0x623   : > { %4445 = vpow2.f32 %v961_v7 }
 0x62e   : > { %v4442_v3 = vpop.eup %4441 }
 0x62f   : > { %v796_v4 = vsel %vm710_vm1, %v4442_v3, 0.0  ;;  %v4444_v5 = vpop.eup %4443 }
 0x630   : > { %797 = vadd.xlane.f32.xlu0 %v796_v4  ;;  %v1321_v6 = vsel %vm710_vm1, %v4444_v5, 0.0  ;;  %v4446_v13 = vpop.eup %4445 }
 0x631   : > { %v963_v16 = vsel %vm710_vm1, %v4446_v13, 0.0 }
 0x634   : > { %1322 = vadd.xlane.f32.xlu0 %v1321_v6 }
 0x64a   : > { %972 = vrot.lane.b32.xlu0 %v5052_v50, %s4721_s24 }
 0x64e   : > { %1326 = vrot.lane.b32.xlu0 %v5055_v51, %s4723_s14 }
 0x652   : > { %1682 = vrot.lane.b32.xlu0 %v5055_v51, %s4725_s4 }
 0x656   : > { %1769 = vrot.lane.b32.xlu0 %v5040_v47, %s4726_s23 }
 0x6b8   : > { %v5173_v8 = vpop.f32.mrf.mxu1 }
 0x6b9   : > { %v798_v9 = vpop.xlane.xlu0 %797 }
 0x6ba   : > { %4447 = vrcp.f32 %v798_v9  ;;  %v4117_v10 = vpop.f32.mrf.mxu1 }
 0x6bd   : > { %v1323_v15 = vpop.xlane.xlu0 %1322 }
 0x6c0   : > { %v1667_v11 = vpop.f32.mrf.mxu1 }
 0x6c1   : > { %v1671_v12 = vsel %vm710_vm1, %v1667_v11, -inf  ;;  %v973_v1 = vpop.permute.xlu0 %972 }
 0x6c2   : > { %v4124_v14 = vpop.f32.mrf.mxu1  ;;  %1672 = vmax.xlane.f32.xlu1 %v1671_v12 }
 0x6c3   : > { %v5248_v14 = vadd.f32 %v5089_v61, %v5042_v48 }
 0x6c5   : > { %v1327_v31 = vpop.permute.xlu0 %1326 }
 0x6c6   : > { %964 = vadd.xlane.f32.xlu1 %v963_v16 }
 0x6c7   : > { %v4448_v17 = vpop.eup %4447 }
 0x6c8   : > { %v800_v18 = vmul.f32 %v4448_v17, %v4442_v3 }
 0x6c9   : > { %v1683_v34 = vpop.permute.xlu0 %1682 }
 0x6ca   : > { %4060 = vmatmul.mubr.msk.f32.vlgmr.msra.gmra.mxu0 %vm710_vm1, %v800_v18 }
 0x6cb   : > { %4070 = vmatpush3.msra.mxu0 %v973_v1  ;;  %4073 = vmatprep.mubr.msk.f32.mxu0 %vm4719_vm0, %v4718_v0 }
 0x6cc   : > { %4071 = vmatprep.subr.mxu0 %v4718_v0 }
 0x6cd   : > { %v1770_v44 = vpop.permute.xlu0 %1769 }
 0x6d7   : > { %970 = vrot.lane.b32.xlu1 %v5055_v51, %s4721_s24 }
 0x6db   : > { %1328 = vrot.lane.b32.xlu1 %v5052_v50, %s4723_s14 }
 0x6df   : > { %1684 = vrot.lane.b32.xlu1 %v5052_v50, %s4725_s4 }
 0x6e3   : > { %1771 = vrot.lane.b32.xlu1 %v5030_v45, %s4726_s23 }
 0x74b   : > { %v1673_v19 = vpop.xlane.xlu1 %1672 }
 0x74c   : > { %v1674_v20 = vsub.f32 %v1667_v11, %v1673_v19 }
 0x74e   : > { %v1675_v21 = vmul.f32 1.442695, %v1674_v20 }
 0x74f   : > { %v965_v23 = vpop.xlane.xlu1 %964 }
 0x750   : > { %4449 = vpow2.f32 %v1675_v21 }
 0x751   : > { %4451 = vrcp.f32 %v965_v23 }
 0x752   : > { %4453 = vrcp.f32 %v1323_v15 }
 0x753   : > { %v971_v24 = vpop.permute.xlu1 %970 }
 0x754   : > { %4072 = vmatpush3.msra.mxu0 %v971_v24 }
 0x755   : > { %4097 = vmatprep.subr.mxu0 %v4718_v0 }
 0x757   : > { %v1329_v28 = vpop.permute.xlu1 %1328 }
 0x75b   : > { %v1685_v33 = vpop.permute.xlu1 %1684 }
 0x75d   : > { %v4450_v25 = vpop.eup %4449 }
 0x75e   : > { %v4452_v26 = vpop.eup %4451  ;;  %v1677_v27 = vsel %vm710_vm1, %v4450_v25, 0.0 }
 0x75f   : > { %1678 = vadd.xlane.f32.xlu1 %v1677_v27  ;;  %v967_v29 = vmul.f32 %v4452_v26, %v4446_v13  ;;  %v4454_v30 = vpop.eup %4453  ;;  %v1772_v37 = vpop.permute.xlu1 %1771  ;;  %v5268_v26 = vadd.f32 %v5091_v62, %v5023_v41  ;;  %v5283_v62 = vmul.f32 0.25, %v5027_v42 }
 0x760   : > { %v1325_v32 = vmul.f32 %v4454_v30, %v4444_v5 }
 0x761   : > { %4074 = vmatmul.mubr.msk.f32.vlgmr.msra.gmra.mxu0 %vm710_vm1, %v967_v29 }
 0x762   : > { %4098 = vmatpush3.msra.mxu0 %v1329_v28  ;;  %4101 = vmatprep.mubr.msk.f32.mxu0 %vm4719_vm0, %v4718_v0 }
 0x763   : > { %4099 = vmatprep.subr.mxu0 %v4718_v0 }
 0x764   : > { %4100 = vmatpush3.msra.mxu0 %v1327_v31 }
 0x765   : > { %4125 = vmatprep.subr.mxu0 %v4718_v0  ;;  %4102 = vmatmul.mubr.msk.f32.vlgmr.msra.gmra.mxu0 %vm710_vm1, %v1325_v32 }
 0x766   : > { %4126 = vmatpush3.msra.mxu0 %v1685_v33  ;;  %4129 = vmatprep.mubr.msk.f32.mxu0 %vm4719_vm0, %v4718_v0 }
 0x767   : > { %4127 = vmatprep.subr.mxu0 %v4718_v0 }
 0x768   : > { %4128 = vmatpush3.msra.mxu0 %v1683_v34 }
 0x769   : > { %4132 = vmatprep.subr.mxu0 %v4718_v0 }
 0x770   : > { %1767 = vrot.lane.b32.xlu1 %v5021_v38, %s4726_s23 }
 0x774   : > { %1860 = vrot.lane.b32.xlu1 %v5055_v51, %s4726_s23 }
 0x78a   : > { %v870_v35 = vpop.f32.mrf.mxu0 }
 0x78b   : > { %874 = vst.msk [vmem:[#allocation2] sm:$0xff] %vm710_vm1, %v870_v35 }
 0x78c   : > { %v4061_v36 = vpop.f32.mrf.mxu0 }
 0x7e8   : > { %v1679_v39 = vpop.xlane.xlu1 %1678 }
 0x7e9   : > { %4455 = vrcp.f32 %v1679_v39 }
 0x7ec   : > { %v1768_v46 = vpop.permute.xlu1 %1767 }
 0x7f0   : > { %v1861_v58 = vpop.permute.xlu1 %1860 }
 0x7f6   : > { %v4456_v40 = vpop.eup %4455 }
 0x7f7   : > { %v1681_v43 = vmul.f32 %v4456_v40, %v4450_v25 }
 0x7f9   : > { %4130 = vmatmul.mubr.msk.f32.vlgmr.msra.gmra.mxu0 %vm710_vm1, %v1681_v43 }
 0x7fa   : > { %4133 = vmatpush3.xpose.msk.msra.mxu0 %vm710_vm1, %v1772_v37  ;;  %4136 = vmatprep.mubr.msk.f32.mxu0 %vm4719_vm0, %v4718_v0 }
 0x7fb   : > { %4134 = vmatprep.subr.mxu0 %v4718_v0 }
 0x7fe   : > { %4135 = vmatpush3.xpose.msk.msra.mxu0 %vm710_vm1, %v1770_v44 }
 0x7ff   : > { %4153 = vmatprep.subr.mxu0 %v4718_v0 }
 0x801   : > { %4137 = vmatmul.mubr.msk.f32.vlgmr.msra.gmra.mxu0 %vm710_vm1, %v1768_v46 }
 0x802   : > { %4157 = vmatprep.mubr.msk.f32.mxu0 %vm4719_vm0, %v4718_v0 }
 0x821   : > { %v5216_v49 = vpop.f32.mrf.mxu0 }
 0x823   : > { %v4075_v52 = vpop.f32.mrf.mxu0 }
 0x825   : > { %v5218_v53 = vpop.f32.mrf.mxu0 }
 0x827   : > { %v4103_v54 = vpop.f32.mrf.mxu0 }
 0x8b9   : > { %v5220_v55 = vpop.f32.mrf.mxu0 }
 0x8bb   : > { %v4131_v56 = vpop.f32.mrf.mxu0 }
 0x8c1   : > { %v1845_v57 = vpop.f32.mrf.mxu0 }
 0x8c2   : > { %v1849_v59 = vsel %vm710_vm1, %v1845_v57, -inf }
 0x8c3   : > { %1850 = vmax.xlane.f32.xlu0 %v1849_v59  ;;  %v4138_v2 = vpop.f32.mrf.mxu0 }
 0x8d9   : > { %1862 = vrot.lane.b32.xlu0 %v5052_v50, %s4726_s23 }
 0x8dd   : > { %1949 = vrot.lane.b32.xlu0 %v5030_v45, %s4727_s20 }
 0x8e1   : > { %1945 = vrot.lane.b32.xlu0 %v5021_v38, %s4727_s20 }
 0x94c   : > { %v1851_v3 = vpop.xlane.xlu0 %1850 }
 0x94d   : > { %v1852_v4 = vsub.f32 %v1845_v57, %v1851_v3 }
 0x94f   : > { %v1853_v5 = vmul.f32 1.442695, %v1852_v4 }
 0x950   : > { %v1863_v6 = vpop.permute.xlu0 %1862 }
 0x951   : > { %4457 = vpow2.f32 %v1853_v5  ;;  %4140 = vmatpush3.msra.mxu1 %v1863_v6 }
 0x952   : > { %4141 = vmatprep.subr.mxu1 %v4718_v0 }
 0x953   : > { %4142 = vmatpush3.msra.mxu1 %v1861_v58 }
 0x954   : > { %4146 = vmatprep.subr.mxu1 %v4718_v0  ;;  %v1950_v11 = vpop.permute.xlu0 %1949 }
 0x958   : > { %v1946_v13 = vpop.permute.xlu0 %1945 }
 0x95e   : > { %v4458_v7 = vpop.eup %4457 }
 0x95f   : > { %v1855_v9 = vsel %vm710_vm1, %v4458_v7, 0.0 }
 0x960   : > { %1856 = vadd.xlane.f32.xlu1 %v1855_v9 }
 0x971   : > { %1947 = vrot.lane.b32.xlu1 %v5040_v47, %s4727_s20  ;;  %v5243_v47 = vadd.f32 %v5093_v63, %v5042_v48 }
 0x9e9   : > { %v1857_v38 = vpop.xlane.xlu1 %1856 }
 0x9ea   : > { %4459 = vrcp.f32 %v1857_v38 }
 0x9ed   : > { %v1948_v12 = vpop.permute.xlu1 %1947 }
 0x9f7   : > { %v4460_v45 = vpop.eup %4459 }
 0x9f8   : > { %v1859_v10 = vmul.f32 %v4460_v45, %v4458_v7 }
 0x9fa   : > { %4144 = vmatmul.mubr.msk.f32.vlgmr.msra.gmra.mxu1 %vm710_vm1, %v1859_v10 }
 0x9fb   : > { %4147 = vmatpush3.xpose.msk.msra.mxu1 %vm710_vm1, %v1950_v11  ;;  %4150 = vmatprep.mubr.msk.f32.mxu1 %vm4719_vm0, %v4718_v0 }
 0x9fc   : > { %4148 = vmatprep.subr.mxu1 %v4718_v0 }
 0x9ff   : > { %4149 = vmatpush3.xpose.msk.msra.mxu1 %vm710_vm1, %v1948_v12 }
 0xa00   : > { %4167 = vmatprep.subr.mxu1 %v4718_v0 }
 0xa02   : > { %4151 = vmatmul.mubr.msk.f32.vlgmr.msra.gmra.mxu1 %vm710_vm1, %v1946_v13 }
 0xa03   : > { %4168 = vmatpush3.msra.mxu1 %v5243_v47  ;;  %4171 = vmatprep.mubr.msk.f32.mxu1 %vm4719_vm0, %v4718_v0 }
 0xa04   : > { %4169 = vmatprep.subr.mxu1 %v4718_v0 }
 0xa05   : > { %4170 = vmatpush3.msra.mxu1 %v5248_v14 }
 0xa06   : > { %4174 = vmatprep.subr.mxu1 %v4718_v0 }
 0xaba   : > { %v5256_v63 = vpop.f32.mrf.mxu1 }
 0xabc   : > { %v4145_v15 = vpop.f32.mrf.mxu1 }
 0xac2   : > { %v2023_v16 = vpop.f32.mrf.mxu1 }
 0xac3   : > { %v2027_v17 = vsel %vm710_vm1, %v2023_v16, -inf }
 0xac4   : > { %2028 = vmax.xlane.f32.xlu1 %v2027_v17  ;;  %v4152_v48 = vpop.f32.mrf.mxu1 }
 0xad5   : > { %2038 = vrot.lane.b32.xlu1 %v5055_v51, %s4727_s20 }
 0xb4d   : > { %v2029_v61 = vpop.xlane.xlu1 %2028 }
 0xb4e   : > { %v2030_v18 = vsub.f32 %v2023_v16, %v2029_v61 }
 0xb50   : > { %v2031_v1 = vmul.f32 1.442695, %v2030_v18 }
 0xb51   : > { %v2039_v24 = vpop.permute.xlu1 %2038 }
 0xb52   : > { %4461 = vpow2.f32 %v2031_v1 }
 0xb5f   : > { %v4462_v19 = vpop.eup %4461 }
 0xb60   : > { %v2033_v20 = vsel %vm710_vm1, %v4462_v19, 0.0 }
 0xb61   : > { %2034 = vadd.xlane.f32.xlu0 %v2033_v20 }
 0xb77   : > { %2040 = vrot.lane.b32.xlu0 %v5052_v50, %s4727_s20  ;;  %v5278_v50 = vadd.f32 %v5087_v60, %v5023_v41 }
 0xbea   : > { %v2035_v21 = vpop.xlane.xlu0 %2034 }
 0xbeb   : > { %4463 = vrcp.f32 %v2035_v21 }
 0xbee   : > { %v2041_v23 = vpop.permute.xlu0 %2040 }
 0xbef   : > { %4154 = vmatpush3.msra.mxu0 %v2041_v23 }
 0xbf0   : > { %4155 = vmatprep.subr.mxu0 %v4718_v0 }
 0xbf1   : > { %4156 = vmatpush3.msra.mxu0 %v2039_v24 }
 0xbf2   : > { %4160 = vmatprep.subr.mxu0 %v4718_v0 }
 0xbf8   : > { %v4464_v51 = vpop.eup %4463 }
 0xbf9   : > { %v2037_v25 = vmul.f32 %v4464_v51, %v4462_v19 }
 0xbfb   : > { %4158 = vmatmul.mubr.msk.f32.vlgmr.msra.gmra.mxu0 %vm710_vm1, %v2037_v25 }
 0xbfc   : > { %4161 = vmatpush3.xpose.msk.msra.mxu0 %vm710_vm1, %v5268_v26  ;;  %4164 = vmatprep.mubr.msk.f32.mxu0 %vm4719_vm0, %v4718_v0 }
 0xbfd   : > { %4162 = vmatprep.subr.mxu0 %v4718_v0 }
 0xc00   : > { %4163 = vmatpush3.xpose.msk.msra.mxu0 %vm710_vm1, %v5278_v50 }
 0xc01   : > { %4181 = vmatprep.subr.mxu0 %v4718_v0 }
 0xc03   : > { %4165 = vmatmul.mubr.msk.f32.vlgmr.msra.gmra.mxu0 %vm710_vm1, %v5283_v62 }
 0xc04   : > { %4185 = vmatprep.mubr.msk.f32.mxu0 %vm4719_vm0, %v4718_v0 }
 0xcbb   : > { %v5290_v27 = vpop.f32.mrf.mxu0 }
 0xcbd   : > { %v4159_v28 = vpop.f32.mrf.mxu0 }
 0xcc3   : > { %v2199_v29 = vpop.f32.mrf.mxu0 }
 0xcc4   : > { %v2203_v41 = vsel %vm710_vm1, %v2199_v29, -inf }
 0xcc5   : > { %2204 = vmax.xlane.f32.xlu1 %v2203_v41  ;;  %v4166_v60 = vpop.f32.mrf.mxu0 }
 0xcd6   : > { %2290 = vrot.lane.b32.xlu1 %v5278_v50, %s4721_s24 }
 0xcda   : > { %2288 = vrot.lane.b32.xlu1 %v5283_v62, %s4721_s24 }
 0xcde   : > { %2383 = vrot.lane.b32.xlu1 %v5248_v14, %s4721_s24 }
 0xd4e   : > { %v2205_v42 = vpop.xlane.xlu1 %2204 }
 0xd4f   : > { %v2206_v30 = vsub.f32 %v2199_v29, %v2205_v42 }
 0xd51   : > { %v2207_v31 = vmul.f32 1.442695, %v2206_v30 }
 0xd52   : > { %v2291_v39 = vpop.permute.xlu1 %2290 }
 0xd53   : > { %4465 = vpow2.f32 %v2207_v31 }
 0xd56   : > { %v2289_v40 = vpop.permute.xlu1 %2288 }
 0xd5a   : > { %v2384_v3 = vpop.permute.xlu1 %2383 }
 0xd60   : > { %v4466_v32 = vpop.eup %4465 }
 0xd61   : > { %v2209_v33 = vsel %vm710_vm1, %v4466_v32, 0.0 }
 0xd62   : > { %2210 = vadd.xlane.f32.xlu0 %v2209_v33 }
 0xd78   : > { %2292 = vrot.lane.b32.xlu0 %v5268_v26, %s4721_s24 }
 0xdeb   : > { %v2211_v34 = vpop.xlane.xlu0 %2210 }
 0xdec   : > { %4467 = vrcp.f32 %v2211_v34 }
 0xdef   : > { %v2293_v37 = vpop.permute.xlu0 %2292 }
 0xdf9   : > { %v4468_v35 = vpop.eup %4467 }
 0xdfa   : > { %v2213_v36 = vmul.f32 %v4468_v35, %v4466_v32 }
 0xdfc   : > { %4172 = vmatmul.mubr.msk.f32.vlgmr.msra.gmra.mxu1 %vm710_vm1, %v2213_v36 }
 0xdfd   : > { %4175 = vmatpush3.xpose.msk.msra.mxu1 %vm710_vm1, %v2293_v37  ;;  %4178 = vmatprep.mubr.msk.f32.mxu1 %vm4719_vm0, %v4718_v0 }
 0xdfe   : > { %4176 = vmatprep.subr.mxu1 %v4718_v0 }
 0xe01   : > { %4177 = vmatpush3.xpose.msk.msra.mxu1 %vm710_vm1, %v2291_v39 }
 0xe02   : > { %4195 = vmatprep.subr.mxu1 %v4718_v0 }
 0xe04   : > { %4179 = vmatmul.mubr.msk.f32.vlgmr.msra.gmra.mxu1 %vm710_vm1, %v2289_v40 }
 0xe05   : > { %4199 = vmatprep.mubr.msk.f32.mxu1 %vm4719_vm0, %v4718_v0 }
 0xebc   : > { %v2283_v43 = vpop.f32.mrf.mxu1 }
 0xebd   : > { %2287 = vst.msk [vmem:[#allocation2 + $0x8] sm:$0xff] %vm710_vm1, %v2283_v43 }
 0xebe   : > { %v4173_v44 = vpop.f32.mrf.mxu1 }
 0xec4   : > { %v2366_v46 = vpop.f32.mrf.mxu1 }
 0xec5   : > { %v2370_v52 = vsel %vm710_vm1, %v2366_v46, -inf }
 0xec6   : > { %2371 = vmax.xlane.f32.xlu0 %v2370_v52  ;;  %v4180_v54 = vpop.f32.mrf.mxu1 }
 0xedc   : > { %2385 = vrot.lane.b32.xlu0 %v5243_v47, %s4721_s24 }
 0xee0   : > { %2471 = vrot.lane.b32.xlu0 %v5268_v26, %s4722_s22 }
 0xee4   : > { %2467 = vrot.lane.b32.xlu0 %v5283_v62, %s4722_s22 }
 0xf4f   : > { %v2372_v56 = vpop.xlane.xlu0 %2371 }
 0xf50   : > { %v2373_v57 = vsub.f32 %v2366_v46, %v2372_v56 }
 0xf52   : > { %v2374_v59 = vmul.f32 1.442695, %v2373_v57 }
 0xf53   : > { %v2386_v2 = vpop.permute.xlu0 %2385 }
 0xf54   : > { %4469 = vpow2.f32 %v2374_v59  ;;  %4182 = vmatpush3.msra.mxu0 %v2386_v2 }
 0xf55   : > { %4183 = vmatprep.subr.mxu0 %v4718_v0 }
 0xf56   : > { %4184 = vmatpush3.msra.mxu0 %v2384_v3 }
 0xf57   : > { %4188 = vmatprep.subr.mxu0 %v4718_v0  ;;  %v2472_v9 = vpop.permute.xlu0 %2471 }
 0xf5b   : > { %v2468_v45 = vpop.permute.xlu0 %2467 }
 0xf61   : > { %v4470_v4 = vpop.eup %4469 }
 0xf62   : > { %v2376_v5 = vsel %vm710_vm1, %v4470_v4, 0.0 }
 0xf63   : > { %2377 = vadd.xlane.f32.xlu1 %v2376_v5 }
 0xf74   : > { %2469 = vrot.lane.b32.xlu1 %v5278_v50, %s4722_s22 }
 0xfec   : > { %v2378_v6 = vpop.xlane.xlu1 %2377 }
 0xfed   : > { %4471 = vrcp.f32 %v2378_v6 }
 0xff0   : > { %v2470_v38 = vpop.permute.xlu1 %2469 }
 0xffa   : > { %v4472_v58 = vpop.eup %4471 }
 0xffb   : > { %v2380_v7 = vmul.f32 %v4472_v58, %v4470_v4 }
 0xffd   : > { %4186 = vmatmul.mubr.msk.f32.vlgmr.msra.gmra.mxu0 %vm710_vm1, %v2380_v7 }
 0xffe   : > { %4189 = vmatpush3.xpose.msk.msra.mxu0 %vm710_vm1, %v2472_v9  ;;  %4192 = vmatprep.mubr.msk.f32.mxu0 %vm4719_vm0, %v4718_v0 }
 0xfff   : > { %4190 = vmatprep.subr.mxu0 %v4718_v0 }
0x1002   : > { %4191 = vmatpush3.xpose.msk.msra.mxu0 %vm710_vm1, %v2470_v38 }
0x1003   : > { %4209 = vmatprep.subr.mxu0 %v4718_v0 }
0x1005   : > { %4193 = vmatmul.mubr.msk.f32.vlgmr.msra.gmra.mxu0 %vm710_vm1, %v2468_v45 }
0x1006   : > { %4213 = vmatprep.mubr.msk.f32.mxu0 %vm4719_vm0, %v4718_v0 }
0x10bd   : > { %v5335_v10 = vpop.f32.mrf.mxu0 }
0x10bf   : > { %v4187_v11 = vpop.f32.mrf.mxu0 }
0x10c5   : > { %v2545_v12 = vpop.f32.mrf.mxu0 }
0x10c6   : > { %v2549_v13 = vsel %vm710_vm1, %v2545_v12, -inf }
0x10c7   : > { %2550 = vmax.xlane.f32.xlu1 %v2549_v13  ;;  %v4194_v15 = vpop.f32.mrf.mxu0 }
0x10d8   : > { %2560 = vrot.lane.b32.xlu1 %v5248_v14, %s4722_s22 }
0x10dc   : > { %2648 = vrot.lane.b32.xlu1 %v5268_v26, %s4723_s14 }
0x10e0   : > { %2644 = vrot.lane.b32.xlu1 %v5283_v62, %s4723_s14 }
0x10e4   : > { %2737 = vrot.lane.b32.xlu1 %v5248_v14, %s4723_s14 }
0x1150   : > { %v2551_v16 = vpop.xlane.xlu1 %2550 }
0x1151   : > { %v2552_v17 = vsub.f32 %v2545_v12, %v2551_v16 }
0x1153   : > { %v2553_v48 = vmul.f32 1.442695, %v2552_v17 }
0x1154   : > { %v2561_v20 = vpop.permute.xlu1 %2560 }
0x1155   : > { %4473 = vpow2.f32 %v2553_v48 }
0x1158   : > { %v2649_v24 = vpop.permute.xlu1 %2648 }
0x115c   : > { %v2645_v25 = vpop.permute.xlu1 %2644 }
0x1160   : > { %v2738_v34 = vpop.permute.xlu1 %2737 }
0x1162   : > { %v4474_v61 = vpop.eup %4473 }
0x1163   : > { %v2555_v18 = vsel %vm710_vm1, %v4474_v61, 0.0 }
0x1164   : > { %2556 = vadd.xlane.f32.xlu0 %v2555_v18 }
0x117a   : > { %2562 = vrot.lane.b32.xlu0 %v5243_v47, %s4722_s22 }
0x117e   : > { %2646 = vrot.lane.b32.xlu0 %v5278_v50, %s4723_s14 }
0x11ed   : > { %v2557_v1 = vpop.xlane.xlu0 %2556 }
0x11ee   : > { %4475 = vrcp.f32 %v2557_v1 }
0x11f1   : > { %v2563_v19 = vpop.permute.xlu0 %2562 }
0x11f2   : > { %4196 = vmatpush3.msra.mxu1 %v2563_v19 }
0x11f3   : > { %4197 = vmatprep.subr.mxu1 %v4718_v0 }
0x11f4   : > { %4198 = vmatpush3.msra.mxu1 %v2561_v20 }
0x11f5   : > { %4202 = vmatprep.subr.mxu1 %v4718_v0  ;;  %v2647_v51 = vpop.permute.xlu0 %2646 }
0x11fb   : > { %v4476_v21 = vpop.eup %4475 }
0x11fc   : > { %v2559_v23 = vmul.f32 %v4476_v21, %v4474_v61 }
0x11fe   : > { %4200 = vmatmul.mubr.msk.f32.vlgmr.msra.gmra.mxu1 %vm710_vm1, %v2559_v23 }
0x11ff   : > { %4203 = vmatpush3.xpose.msk.msra.mxu1 %vm710_vm1, %v2649_v24  ;;  %4206 = vmatprep.mubr.msk.f32.mxu1 %vm4719_vm0, %v4718_v0 }
0x1200   : > { %4204 = vmatprep.subr.mxu1 %v4718_v0 }
0x1203   : > { %4205 = vmatpush3.xpose.msk.msra.mxu1 %vm710_vm1, %v2647_v51 }
0x1204   : > { %4223 = vmatprep.subr.mxu1 %v4718_v0 }
0x1206   : > { %4207 = vmatmul.mubr.msk.f32.vlgmr.msra.gmra.mxu1 %vm710_vm1, %v2645_v25 }
0x1207   : > { %4227 = vmatprep.mubr.msk.f32.mxu1 %vm4719_vm0, %v4718_v0 }
0x12be   : > { %v5363_v28 = vpop.f32.mrf.mxu1 }
0x12c0   : > { %v4201_v29 = vpop.f32.mrf.mxu1 }
0x12c6   : > { %v2722_v41 = vpop.f32.mrf.mxu1 }
0x12c7   : > { %v2726_v60 = vsel %vm710_vm1, %v2722_v41, -inf }
0x12c8   : > { %2727 = vmax.xlane.f32.xlu0 %v2726_v60  ;;  %v4208_v42 = vpop.f32.mrf.mxu1 }
0x12de   : > { %2739 = vrot.lane.b32.xlu0 %v5243_v47, %s4723_s14 }
0x12e2   : > { %2825 = vrot.lane.b32.xlu0 %v5268_v26, %s4724_s0 }
0x12e6   : > { %2821 = vrot.lane.b32.xlu0 %v5283_v62, %s4724_s0 }
0x1351   : > { %v2728_v30 = vpop.xlane.xlu0 %2727 }
0x1352   : > { %v2729_v31 = vsub.f32 %v2722_v41, %v2728_v30 }
0x1354   : > { %v2730_v32 = vmul.f32 1.442695, %v2729_v31 }
0x1355   : > { %v2740_v33 = vpop.permute.xlu0 %2739 }
0x1356   : > { %4477 = vpow2.f32 %v2730_v32  ;;  %4210 = vmatpush3.msra.mxu0 %v2740_v33 }
0x1357   : > { %4211 = vmatprep.subr.mxu0 %v4718_v0 }
0x1358   : > { %4212 = vmatpush3.msra.mxu0 %v2738_v34 }
0x1359   : > { %4216 = vmatprep.subr.mxu0 %v4718_v0  ;;  %v2826_v43 = vpop.permute.xlu0 %2825 }
0x135d   : > { %v2822_v46 = vpop.permute.xlu0 %2821 }
0x1363   : > { %v4478_v35 = vpop.eup %4477 }
0x1364   : > { %v2732_v36 = vsel %vm710_vm1, %v4478_v35, 0.0 }
0x1365   : > { %2733 = vadd.xlane.f32.xlu1 %v2732_v36 }
0x1376   : > { %2823 = vrot.lane.b32.xlu1 %v5278_v50, %s4724_s0 }
0x13ee   : > { %v2734_v37 = vpop.xlane.xlu1 %2733 }
0x13ef   : > { %4479 = vrcp.f32 %v2734_v37 }
0x13f2   : > { %v2824_v44 = vpop.permute.xlu1 %2823 }
0x13fc   : > { %v4480_v39 = vpop.eup %4479 }
0x13fd   : > { %v2736_v40 = vmul.f32 %v4480_v39, %v4478_v35 }
0x13ff   : > { %4214 = vmatmul.mubr.msk.f32.vlgmr.msra.gmra.mxu0 %vm710_vm1, %v2736_v40 }
0x1400   : > { %4217 = vmatpush3.xpose.msk.msra.mxu0 %vm710_vm1, %v2826_v43  ;;  %4220 = vmatprep.mubr.msk.f32.mxu0 %vm4719_vm0, %v4718_v0 }
0x1401   : > { %4218 = vmatprep.subr.mxu0 %v4718_v0 }
0x1404   : > { %4219 = vmatpush3.xpose.msk.msra.mxu0 %vm710_vm1, %v2824_v44 }
0x1405   : > { %4237 = vmatprep.subr.mxu0 %v4718_v0 }
0x1407   : > { %4221 = vmatmul.mubr.msk.f32.vlgmr.msra.gmra.mxu0 %vm710_vm1, %v2822_v46 }
0x1408   : > { %4241 = vmatprep.mubr.msk.f32.mxu0 %vm4719_vm0, %v4718_v0 }
0x14bf   : > { %v5387_v52 = vpop.f32.mrf.mxu0 }
0x14c1   : > { %v4215_v54 = vpop.f32.mrf.mxu0 }
0x14c7   : > { %v2899_v56 = vpop.f32.mrf.mxu0 }
0x14c8   : > { %v2903_v57 = vsel %vm710_vm1, %v2899_v56, -inf }
0x14c9   : > { %2904 = vmax.xlane.f32.xlu1 %v2903_v57  ;;  %v4222_v59 = vpop.f32.mrf.mxu0 }
0x14da   : > { %2914 = vrot.lane.b32.xlu1 %v5248_v14, %s4724_s0 }
0x14de   : > { %3002 = vrot.lane.b32.xlu1 %v5268_v26, %s4725_s4 }
0x14e2   : > { %2998 = vrot.lane.b32.xlu1 %v5283_v62, %s4725_s4 }
0x14e6   : > { %3091 = vrot.lane.b32.xlu1 %v5248_v14, %s4725_s4 }
0x1552   : > { %v2905_v2 = vpop.xlane.xlu1 %2904 }
0x1553   : > { %v2906_v3 = vsub.f32 %v2899_v56, %v2905_v2 }
0x1555   : > { %v2907_v4 = vmul.f32 1.442695, %v2906_v3 }
0x1556   : > { %v2915_v9 = vpop.permute.xlu1 %2914 }
0x1557   : > { %4481 = vpow2.f32 %v2907_v4 }
0x155a   : > { %v3003_v11 = vpop.permute.xlu1 %3002 }
0x155e   : > { %v2999_v13 = vpop.permute.xlu1 %2998 }
0x1562   : > { %v3092_v21 = vpop.permute.xlu1 %3091 }
0x1564   : > { %v4482_v5 = vpop.eup %4481 }
0x1565   : > { %v2909_v6 = vsel %vm710_vm1, %v4482_v5, 0.0 }
0x1566   : > { %2910 = vadd.xlane.f32.xlu0 %v2909_v6 }
0x157c   : > { %2916 = vrot.lane.b32.xlu0 %v5243_v47, %s4724_s0 }
0x1580   : > { %3000 = vrot.lane.b32.xlu0 %v5278_v50, %s4725_s4 }
0x15ef   : > { %v2911_v58 = vpop.xlane.xlu0 %2910 }
0x15f0   : > { %4483 = vrcp.f32 %v2911_v58 }
0x15f3   : > { %v2917_v7 = vpop.permute.xlu0 %2916 }
0x15f4   : > { %4224 = vmatpush3.msra.mxu1 %v2917_v7 }
0x15f5   : > { %4225 = vmatprep.subr.mxu1 %v4718_v0 }
0x15f6   : > { %4226 = vmatpush3.msra.mxu1 %v2915_v9 }
0x15f7   : > { %4230 = vmatprep.subr.mxu1 %v4718_v0  ;;  %v3001_v12 = vpop.permute.xlu0 %3000 }
0x15fd   : > { %v4484_v38 = vpop.eup %4483 }
0x15fe   : > { %v2913_v45 = vmul.f32 %v4484_v38, %v4482_v5 }
0x1600   : > { %4228 = vmatmul.mubr.msk.f32.vlgmr.msra.gmra.mxu1 %vm710_vm1, %v2913_v45 }
0x1601   : > { %4231 = vmatpush3.xpose.msk.msra.mxu1 %vm710_vm1, %v3003_v11  ;;  %4234 = vmatprep.mubr.msk.f32.mxu1 %vm4719_vm0, %v4718_v0 }
0x1602   : > { %4232 = vmatprep.subr.mxu1 %v4718_v0 }
0x1605   : > { %4233 = vmatpush3.xpose.msk.msra.mxu1 %vm710_vm1, %v3001_v12 }
0x1606   : > { %4251 = vmatprep.subr.mxu1 %v4718_v0 }
0x1608   : > { %4235 = vmatmul.mubr.msk.f32.vlgmr.msra.gmra.mxu1 %vm710_vm1, %v2999_v13 }
0x1609   : > { %4255 = vmatprep.mubr.msk.f32.mxu1 %vm4719_vm0, %v4718_v0 }
0x16c0   : > { %v5415_v15 = vpop.f32.mrf.mxu1 }
0x16c2   : > { %v4229_v16 = vpop.f32.mrf.mxu1 }
0x16c3   : > { %v4425_v16 = vld [vmem:[#allocation11 + $0x38] sm:$0xff]  }
0x16c8   : > { %v3076_v17 = vpop.f32.mrf.mxu1 }
0x16c9   : > { %v3080_v48 = vsel %vm710_vm1, %v3076_v17, -inf }
0x16ca   : > { %3081 = vmax.xlane.f32.xlu0 %v3080_v48  ;;  %v4236_v61 = vpop.f32.mrf.mxu1  ;;  %v4427_v48 = vld [vmem:[#allocation11 + $0x28] sm:$0xff]  }
0x16cb   : > { %v4428_v61 = vld [vmem:[#allocation11 + $0x20] sm:$0xff]  }
0x16e0   : > { %3093 = vrot.lane.b32.xlu0 %v5243_v47, %s4725_s4 }
0x16e4   : > { %3179 = vrot.lane.b32.xlu0 %v5268_v26, %s4726_s23 }
0x16e8   : > { %3175 = vrot.lane.b32.xlu0 %v5283_v62, %s4726_s23 }
0x1753   : > { %v3082_v18 = vpop.xlane.xlu0 %3081 }
0x1754   : > { %v3083_v1 = vsub.f32 %v3076_v17, %v3082_v18  ;;  %v4426_v17 = vld [vmem:[#allocation11 + $0x30] sm:$0xff]   ;;  %v4429_v18 = vld [vmem:[#allocation11 + $0x18] sm:$0xff]  }
0x1756   : > { %v3084_v19 = vmul.f32 1.442695, %v3083_v1  ;;  %v4430_v1 = vld [vmem:[#allocation11 + $0x10] sm:$0xff]  }
0x1757   : > { %v3094_v20 = vpop.permute.xlu0 %3093 }
0x1758   : > { %4485 = vpow2.f32 %v3084_v19  ;;  %4238 = vmatpush3.msra.mxu0 %v3094_v20  ;;  %v4431_v19 = vld [vmem:[#allocation11 + $0x8] sm:$0xff]   ;;  %v4432_v20 = vld [vmem:[#allocation11] sm:$0xff]  }
0x1759   : > { %4239 = vmatprep.subr.mxu0 %v4718_v0 }
0x175a   : > { %4240 = vmatpush3.msra.mxu0 %v3092_v21 }
0x175b   : > { %4244 = vmatprep.subr.mxu0 %v4718_v0  ;;  %v3180_v41 = vpop.permute.xlu0 %3179 }
0x175f   : > { %v3176_v42 = vpop.permute.xlu0 %3175 }
0x1765   : > { %v4486_v23 = vpop.eup %4485 }
0x1766   : > { %v3086_v24 = vsel %vm710_vm1, %v4486_v23, 0.0 }
0x1767   : > { %3087 = vadd.xlane.f32.xlu1 %v3086_v24 }
0x1778   : > { %3177 = vrot.lane.b32.xlu1 %v5278_v50, %s4726_s23 }
0x17f0   : > { %v3088_v51 = vpop.xlane.xlu1 %3087 }
0x17f1   : > { %4487 = vrcp.f32 %v3088_v51 }
0x17f4   : > { %v3178_v60 = vpop.permute.xlu1 %3177 }
0x17fe   : > { %v4488_v25 = vpop.eup %4487 }
0x17ff   : > { %v3090_v29 = vmul.f32 %v4488_v25, %v4486_v23 }
0x1801   : > { %4242 = vmatmul.mubr.msk.f32.vlgmr.msra.gmra.mxu0 %vm710_vm1, %v3090_v29 }
0x1802   : > { %4245 = vmatpush3.xpose.msk.msra.mxu0 %vm710_vm1, %v3180_v41  ;;  %4248 = vmatprep.mubr.msk.f32.mxu0 %vm4719_vm0, %v4718_v0  ;;  %v3896_v41 = vld [vmem:[%s5581_s7] ss:$0 sm:$0xff] }
0x1803   : > { %4246 = vmatprep.subr.mxu0 %v4718_v0 }
0x1806   : > { %4247 = vmatpush3.xpose.msk.msra.mxu0 %vm710_vm1, %v3178_v60 }
0x1807   : > { %4265 = vmatprep.subr.mxu0 %v4718_v0 }
0x1809   : > { %4249 = vmatmul.mubr.msk.f32.vlgmr.msra.gmra.mxu0 %vm710_vm1, %v3176_v42 }
0x180a   : > { %4269 = vmatprep.mubr.msk.f32.mxu0 %vm4719_vm0, %v4718_v0 }
0x18c1   : > { %v5439_v30 = vpop.f32.mrf.mxu0 }
0x18c3   : > { %v4243_v31 = vpop.f32.mrf.mxu0 }
0x18c9   : > { %v3253_v32 = vpop.f32.mrf.mxu0 }
0x18ca   : > { %v3257_v33 = vsel %vm710_vm1, %v3253_v32, -inf }
0x18cb   : > { %3258 = vmax.xlane.f32.xlu1 %v3257_v33  ;;  %v4250_v34 = vpop.f32.mrf.mxu0 }
0x18dc   : > { %3268 = vrot.lane.b32.xlu1 %v5248_v14, %s4726_s23 }
0x18e0   : > { %3356 = vrot.lane.b32.xlu1 %v5268_v26, %s4727_s20 }
0x18e4   : > { %3352 = vrot.lane.b32.xlu1 %v5283_v62, %s4727_s20 }
0x1954   : > { %v3259_v35 = vpop.xlane.xlu1 %3258 }
0x1955   : > { %v3260_v36 = vsub.f32 %v3253_v32, %v3259_v35 }
0x1957   : > { %v3261_v37 = vmul.f32 1.442695, %v3260_v36 }
0x1958   : > { %v3269_v44 = vpop.permute.xlu1 %3268 }
0x1959   : > { %4489 = vpow2.f32 %v3261_v37 }
0x195c   : > { %v3357_v54 = vpop.permute.xlu1 %3356 }
0x1960   : > { %v3353_v56 = vpop.permute.xlu1 %3352 }
0x1966   : > { %v4490_v39 = vpop.eup %4489 }
0x1967   : > { %v3263_v40 = vsel %vm710_vm1, %v4490_v39, 0.0 }
0x1968   : > { %3264 = vadd.xlane.f32.xlu0 %v3263_v40 }
0x197e   : > { %3270 = vrot.lane.b32.xlu0 %v5243_v47, %s4726_s23 }
0x1982   : > { %3354 = vrot.lane.b32.xlu0 %v5278_v50, %s4727_s20 }
0x19f1   : > { %v3265_v43 = vpop.xlane.xlu0 %3264 }
0x19f2   : > { %4491 = vrcp.f32 %v3265_v43 }
0x19f5   : > { %v3271_v26 = vpop.permute.xlu0 %3270 }
0x19f6   : > { %4252 = vmatpush3.msra.mxu1 %v3271_v26 }
0x19f7   : > { %4253 = vmatprep.subr.mxu1 %v4718_v0 }
0x19f8   : > { %4254 = vmatpush3.msra.mxu1 %v3269_v44 }
0x19f9   : > { %4258 = vmatprep.subr.mxu1 %v4718_v0  ;;  %v3355_v50 = vpop.permute.xlu0 %3354 }
0x19ff   : > { %v4492_v62 = vpop.eup %4491 }
0x1a00   : > { %v3267_v46 = vmul.f32 %v4492_v62, %v4490_v39 }
0x1a02   : > { %4256 = vmatmul.mubr.msk.f32.vlgmr.msra.gmra.mxu1 %vm710_vm1, %v3267_v46 }
0x1a03   : > { %4259 = vmatpush3.xpose.msk.msra.mxu1 %vm710_vm1, %v3357_v54  ;;  %4262 = vmatprep.mubr.msk.f32.mxu1 %vm4719_vm0, %v4718_v0 }
0x1a04   : > { %4260 = vmatprep.subr.mxu1 %v4718_v0 }
0x1a07   : > { %4261 = vmatpush3.xpose.msk.msra.mxu1 %vm710_vm1, %v3355_v50 }
0x1a0a   : > { %4263 = vmatmul.mubr.msk.f32.vlgmr.msra.gmra.mxu1 %vm710_vm1, %v3353_v56 }
0x1ac2   : > { %v3343_v57 = vpop.f32.mrf.mxu1 }
0x1ac4   : > { %v4257_v59 = vpop.f32.mrf.mxu1 }
0x1aca   : > { %v3430_v2 = vpop.f32.mrf.mxu1 }
0x1acb   : > { %v3434_v3 = vsel %vm710_vm1, %v3430_v2, -inf }
0x1acc   : > { %3435 = vmax.xlane.f32.xlu0 %v3434_v3  ;;  %v4264_v4 = vpop.f32.mrf.mxu1 }
0x1ae2   : > { %3447 = vrot.lane.b32.xlu0 %v5243_v47, %s4727_s20 }
0x1ae6   : > { %1050 = vrot.lane.b32.xlu0 %v5216_v49, %s4727_s20 }
0x1aea   : > { %1228 = vrot.lane.b32.xlu0 %v5132_v22, %s4726_s23 }
0x1aee   : > { %1406 = vrot.lane.b32.xlu0 %v5218_v53, %s4725_s4 }
0x1af2   : > { %1584 = vrot.lane.b32.xlu0 %v5173_v8, %s4724_s0 }
0x1af6   : > { %1762 = vrot.lane.b32.xlu0 %v5220_v55, %s4723_s14 }
0x1afa   : > { %1940 = vrot.lane.b32.xlu0 %v5256_v63, %s4722_s22 }
0x1afe   : > { %2118 = vrot.lane.b32.xlu0 %v5290_v27, %s4721_s24 }
0x1b55   : > { %v3436_v47 = vpop.xlane.xlu0 %3435 }
0x1b56   : > { %v3437_v49 = vsub.f32 %v3430_v2, %v3436_v47 }
0x1b58   : > { %v3438_v5 = vmul.f32 1.442695, %v3437_v49 }
0x1b59   : > { %v3448_v6 = vpop.permute.xlu0 %3447 }
0x1b5a   : > { %4493 = vpow2.f32 %v3438_v5  ;;  %4266 = vmatpush3.msra.mxu0 %v3448_v6 }
0x1b5b   : > { %4267 = vmatprep.subr.mxu0 %v4718_v0 }
0x1b5d   : > { %v1051_v22 = vpop.permute.xlu0 %1050 }
0x1b5e   : > { %1054 = vst.msk [vmem:[#allocation2] sm:$0xff] %vm1053_vm2, %v1051_v22 }
0x1b61   : > { %v1229_v8 = vpop.permute.xlu0 %1228 }
0x1b62   : > { %1232 = vst.msk [vmem:[#allocation2] sm:$0xff] %vm1231_vm3, %v1229_v8 }
0x1b65   : > { %v1407_v53 = vpop.permute.xlu0 %1406 }
0x1b66   : > { %1410 = vst.msk [vmem:[#allocation2] sm:$0xff] %vm1409_vm4, %v1407_v53 }
0x1b67   : > { %v4494_v55 = vpop.eup %4493 }
0x1b68   : > { %v3440_v63 = vsel %vm710_vm1, %v4494_v55, 0.0 }
0x1b69   : > { %3441 = vadd.xlane.f32.xlu1 %v3440_v63  ;;  %v1585_v27 = vpop.permute.xlu0 %1584 }
0x1b6a   : > { %1588 = vst.msk [vmem:[#allocation2] sm:$0xff] %vm1587_vm5, %v1585_v27 }
0x1b6d   : > { %v1763_v58 = vpop.permute.xlu0 %1762 }
0x1b6e   : > { %1766 = vst.msk [vmem:[#allocation2] sm:$0xff] %vm1765_vm6, %v1763_v58 }
0x1b71   : > { %v1941_v7 = vpop.permute.xlu0 %1940 }
0x1b72   : > { %1944 = vst.msk [vmem:[#allocation2] sm:$0xff] %vm1943_vm7, %v1941_v7 }
0x1b75   : > { %v2119_v9 = vpop.permute.xlu0 %2118 }
0x1b76   : > { %2122 = vst.msk [vmem:[#allocation2] sm:$0xff] %vm2121_vm8, %v2119_v9 }
0x1b7a   : > { %3445 = vrot.lane.b32.xlu1 %v5248_v14, %s4727_s20 }
0x1b7d   : > { %v3529_v51 = vld [vmem:[#allocation2] sm:$0xff] }
0x1b7e   : > { %2463 = vrot.lane.b32.xlu1 %v5335_v10, %s4727_s20 }
0x1b82   : > { %2640 = vrot.lane.b32.xlu1 %v5363_v28, %s4726_s23 }
0x1b86   : > { %2817 = vrot.lane.b32.xlu1 %v5387_v52, %s4725_s4 }
0x1b8a   : > { %2994 = vrot.lane.b32.xlu1 %v5415_v15, %s4724_s0 }
0x1b8e   : > { %3171 = vrot.lane.b32.xlu1 %v5439_v30, %s4723_s14 }
0x1b92   : > { %3348 = vrot.lane.b32.xlu1 %v3343_v57, %s4722_s22 }
0x1bf2   : > { %v3442_v38 = vpop.xlane.xlu1 %3441 }
0x1bf3   : > { %4495 = vrcp.f32 %v3442_v38 }
0x1bf6   : > { %v3446_v14 = vpop.permute.xlu1 %3445 }
0x1bf7   : > { %4268 = vmatpush3.msra.mxu0 %v3446_v14 }
0x1bf8   : > { %4272 = vmatprep.subr.bf16.mxu0 %v4718_v0 }
0x1bfa   : > { %v2464_v10 = vpop.permute.xlu1 %2463 }
0x1bfb   : > { %2466 = vst.msk [vmem:[#allocation2 + $0x8] sm:$0xff] %vm1053_vm2, %v2464_v10 }
0x1bfe   : > { %v2641_v28 = vpop.permute.xlu1 %2640 }
0x1bff   : > { %2643 = vst.msk [vmem:[#allocation2 + $0x8] sm:$0xff] %vm1231_vm3, %v2641_v28 }
0x1c00   : > { %v4496_v52 = vpop.eup %4495 }
0x1c01   : > { %v3444_v45 = vmul.f32 %v4496_v52, %v4494_v55 }
0x1c02   : > { %v2818_v11 = vpop.permute.xlu1 %2817 }
0x1c03   : > { %2820 = vst.msk [vmem:[#allocation2 + $0x8] sm:$0xff] %vm1409_vm4, %v2818_v11  ;;  %4270 = vmatmul.mubr.msk.f32.vlgmr.msra.gmra.mxu0 %vm710_vm1, %v3444_v45 }
0x1c04   : > { %4288 = vmatprep.mubr.msk.bf16.mxu0 %vm4719_vm0, %v4718_v0  ;;  %4273 = vmatpush3.bf16.msra.mxu0 %v4425_v16 }
0x1c05   : > { %4274 = vmatprep.subr.bf16.mxu0 %v4718_v0 }
0x1c06   : > { %v2995_v12 = vpop.permute.xlu1 %2994 }
0x1c07   : > { %2997 = vst.msk [vmem:[#allocation2 + $0x8] sm:$0xff] %vm1587_vm5, %v2995_v12 }
0x1c08   : > { %4275 = vmatpush3.bf16.msra.mxu0 %v4426_v17 }
0x1c09   : > { %4276 = vmatprep.subr.bf16.mxu0 %v4718_v0 }
0x1c0a   : > { %v3172_v13 = vpop.permute.xlu1 %3171 }
0x1c0b   : > { %3174 = vst.msk [vmem:[#allocation2 + $0x8] sm:$0xff] %vm1765_vm6, %v3172_v13 }
0x1c0c   : > { %4277 = vmatpush3.bf16.msra.mxu0 %v4427_v48 }
0x1c0d   : > { %4278 = vmatprep.subr.bf16.mxu0 %v4718_v0 }
0x1c0e   : > { %v3349_v15 = vpop.permute.xlu1 %3348 }
0x1c0f   : > { %3351 = vst.msk [vmem:[#allocation2 + $0x8] sm:$0xff] %vm1943_vm7, %v3349_v15 }
0x1c10   : > { %4279 = vmatpush3.bf16.msra.mxu0 %v4428_v61 }
0x1c11   : > { %4280 = vmatprep.subr.bf16.mxu0 %v4718_v0 }
0x1c14   : > { %4281 = vmatpush3.bf16.msra.mxu0 %v4429_v18 }
0x1c15   : > { %4282 = vmatprep.subr.bf16.mxu0 %v4718_v0 }
0x1c18   : > { %4283 = vmatpush3.bf16.msra.mxu0 %v4430_v1 }
0x1c19   : > { %4284 = vmatprep.subr.bf16.mxu0 %v4718_v0 }
0x1c1c   : > { %4285 = vmatpush3.bf16.msra.mxu0 %v4431_v19 }
0x1c1d   : > { %4286 = vmatprep.subr.bf16.mxu0 %v4718_v0 }
0x1c20   : > { %4287 = vmatpush3.bf16.msra.mxu0 %v4432_v20 }
0x1cc3   : > { %v3520_v21 = vpop.f32.mrf.mxu0 }
0x1cc4   : > { %3525 = vrot.lane.b32.xlu1 %v3520_v21, %s4721_s24  ;;  %s4637_s24 = scalar_lea.vmem %s4636_s15, 512 }
0x1cc5   : > { %v4271_v23 = vpop.f32.mrf.mxu0  ;;  %p4639_p13 = scmp.lt.s32.totalorder %s4637_s24, %s4631_s17 }
0x1cc7   : > { %p4640_p1 = por %p4639_p13, %p4638_p9 }
0x1cc9   : > { %p4641_p4 = pnand %p4640_p1, %p4634_p11 }
0x1d36   : > { %v3526_v24 = vpop.permute.xlu1 %3525 }
0x1d37   : > { %3528 = vst.msk [vmem:[#allocation2 + $0x8] sm:$0xff] %vm2121_vm8, %v3526_v24 }
0x1d3e   : > { %v3530_v25 = vld [vmem:[#allocation2 + $0x8] sm:$0xff] }
0x1d3f   : > { %v3531_v29 = vpack.c.bf16 %v3530_v25, %v3529_v51 }
0x1d41   : > { %4289 = vmatmul.mubr.bf16.vlgmr.msra.gmra.mxu0 %v3531_v29 }
0x1e01   : > { %v3637_v60 = vpop.f32.mrf.mxu0 }
0x1e02   : > { %v3638_v0 = vadd.f32 %v3896_v41, %v3637_v60 }
0x1e03   : > { %v4290_v42 = vpop.f32.mrf.mxu0 }
0x1e04   : > { %3644 = vst [vmem:[%s407_s18] sm:$0xff] %v3638_v0 }
0x1e05   : > { %v3640_v30 = vpop.f32.mrf.mxu0 }
0x1e06   : > { %v3641_v31 = vadd.f32 %v3896_v41, %v3640_v30 }
0x1e07   : > { %v4291_v32 = vpop.f32.mrf.mxu0 }
0x1e08   : > { %3645 = vst [vmem:[%s407_s18 + $0x8] sm:$0xff] %v3641_v31 }
0x1e09   : > { %4644 = shalt.err (!%p4641_p4)
}
0x1e0a   : > { %s4645_s22 = scalar_lea.hbm %s5531_s2, 256  ;;  %s4649_s4 = scalar_lea.hbm %s5582_s8, 512 }
0x1e0b   : > { %p4646_p3 = scmp.ne.s32.totalorder %s5531_s2, %s4645_s22  ;;  %p4650_p2 = scmp.lt.s32.totalorder %s5531_s2, %s5582_s8 }
0x1e0c   : > { %p4651_p6 = scmp.lt.s32.totalorder %s4649_s4, %s4645_s22 }
0x1e0d   : > { %p4647_p7 = pnand %p4646_p3, %p5616_p5 }
0x1e0e   : > { %p4652_p12 = por %p4651_p6, %p4650_p2 }
0x1e0f   : > { %p4648_p8 = pneg %p4647_p7 }
0x1e11   : > { %p4653_p0 = pnand %p4652_p12, %p4648_p8 }
0x1e13   : > { %4656 = shalt.err (!%p4653_p0)
}
0x1e14   : > { %s4729_s21 = smov 128   ;;  %s4730_s10 = smov 8  }
0x1e15   : > { %4308 = dma.vmem_to_hbm [thread:$0]  (%p5616_p5), %s5526_s3, 256, %s5531_s2, %s3647_s13, %s4729_s21, %s4729_s21, %s4730_s10  }
0x1e16 PF: > { %s3675_s18 = sand.u32 1, %s4695_s27   ;;  %p5617_p10 = scmp.ne.s32.totalorder %s5597_s12, 0 }
0x1e17   : > { %p5618_p11 = scmp.ge.s32.totalorder %s4707_s30, 2  ;;  %s3676_s25 = scalar_lea.sflag [#allocation5], %s3675_s18 }
0x1e19   : > { %p4328_p9 = pnand %p5618_p11, %p5617_p10 }
0x1e1b   : > { %p4329_p13 = pneg %p4328_p9 }
0x1e1d   : > { %4690 = dma.done.wait (%p4329_p13), %s3676_s25, 256  }
0x1e1e   : > { %4692 = vsyncadd (%p4329_p13), %s3676_s25, 4294967040  ;;  %s5619_s16 = sld [smem:[#allocation18_spill]]  ;;  %p25_p1 = scmp.ge.s32.totalorder %s4851_s19, 4  }
0x1e1f   : > { %s5620_s29 = sld [smem:[#allocation19_spill]]  ;;  %s5621_s27 = smov %s4699_s28 }
0x1e20   : > { %s5623_s30 = smov %s4851_s19  ;;  %27 = sbr.rel (!%p25_p1) target bundleno = 13 (0xd), region = 122 }
0x1e24   : > { %s5622_s28 = smov %s5619_s16 }
0x1e25   :  { %3681 = vsyncpa [#allocation4], 1 }
0x1e26   :  { %3683 = vsyncpa [#allocation4 + $0x1], 1 }
0x1e27   :  { %3684 = vsyncpa [#allocation7], 1 }
0x1e28   :  { %3686 = vsyncpa [#allocation7 + $0x1], 1 }
0x1e29   :  { %3687 = vsyncpa [#allocation10], 1 }
0x1e2a   :  { %3688 = vsyncpa [#allocation5], 1 }
0x1e2b   :  { %3690 = vsyncpa [#allocation5 + $0x1], 1 }

</bundles_post_ra>
